<compile_context>
chip_gen: v5e
topology: v5e:2x2
jax: 0.10.0
libtpu: 0.0.40
codegen_flags: <defaults>
</compile_context>

<pallas_src>
import math
import jax
import jax.numpy as jnp
from jax.experimental import pallas as pl
from jax.experimental.pallas import tpu as pltpu


# ---------------- helpers ----------------

def _lane_shift(x, s):
    """Cyclic shift along the last (lane) axis: out[..., p] = x[..., p + s].

    Implemented as two lane slices + concat (safe lowering on all TPU
    generations).  Wrapped lanes only ever influence masked pad columns or
    dropped garbage rows, so the wrap-around is harmless.
    """
    if s == 0:
        return x
    return jnp.concatenate([x[:, s:], x[:, :s]], axis=1)


# ---------------- fused Pallas kernel (whole batch, single step) ----------------

def _make_fused_kernel(Wp, KH=7):
    def kernel(x_ref, wa_ref, ba_ref, mask_ref, wb_ref, bb_ref, oth_ref, o_ref):
        # x_ref: (3, Lpad) -- whole batch, width already zero-padded,
        # (n, h, w) flattened onto the lane axis (Lpad multiple of 128).
        x2 = x_ref[...]

        # ---- conva (1x3): +-1 width taps == +-1 lane shifts ----
        xm1 = _lane_shift(x2, -1)            # value[p] = x[p-1]  (kw = 0)
        xp1 = _lane_shift(x2, +1)            # value[p] = x[p+1]  (kw = 2)
        cols_a = jnp.concatenate([xm1, x2, xp1], axis=0)       # (9, L), rows (kw, ci)
        var1 = jnp.dot(wa_ref[...], cols_a,
                       preferred_element_type=jnp.float32)     # (8, L)
        # bias_a, then zero the width-pad columns: var1 becomes exactly the
        # width-padded conva output that convb's padding=(0,1) sees.
        var1 = (var1 + ba_ref[...]) * mask_ref[...]

        # ---- convb (7x1): height taps are lane shifts by kh*Wp; pieces are
        # 8-sublane aligned so this concat is cheap ----
        cols_b = jnp.concatenate(
            [_lane_shift(var1, kh * Wp) for kh in range(KH)],
            axis=0)                                            # (56, L), rows (kh, cm)
        out = jnp.dot(wb_ref[...], cols_b,
                      preferred_element_type=jnp.float32)      # (4, L)

        # fused bias_b + `other` (torch trailing-dim broadcast along width == lanes)
        o_ref[...] = out + bb_ref[...] + oth_ref[...]

    return kernel


# ---------------- model ----------------

def init_params(key):
    k1, k2, k3, k4 = jax.random.split(key, 4)
    # conva: Conv2d(3, 8, (1,3)) -> weight (8,3,1,3), bias (8,)
    fan_a = 3 * 1 * 3
    ba = 1.0 / math.sqrt(fan_a)
    wa = jax.random.uniform(k1, (8, 3, 1, 3), jnp.float32, -ba, ba)
    bias_a = jax.random.uniform(k2, (8,), jnp.float32, -ba, ba)
    # convb: Conv2d(8, 4, (7,1)) -> weight (4,8,7,1), bias (4,)
    fan_b = 8 * 7 * 1
    bb = 1.0 / math.sqrt(fan_b)
    wb = jax.random.uniform(k3, (4, 8, 7, 1), jnp.float32, -bb, bb)
    bias_b = jax.random.uniform(k4, (4,), jnp.float32, -bb, bb)
    return wa, bias_a, wb, bias_b


def model_forward(x, params, other):
    """x: (N, 3, H, W) NCHW float32; other: (N,) with N == W + 2."""
    wa, ba, wb, bb = params
    N, Cin, H, W = x.shape
    Wp = W + 2            # padded width == convb output width
    Hout = H - 6
    Wout = Wp
    assert other.shape == (N,) and N == Wout, (
        "`var2 + other` (torch trailing-dim broadcast) requires N == W + 2")

    L = N * H * Wp
    Lpad = ((L + 127) // 128) * 128          # lane-dense, multiple of 128

    # --- tiny host-side prep (input pad/flatten + param reordering only) ---
    # x: width zero-pad, move channels to sublanes, flatten (n, h, w) on lanes.
    xpf = jnp.pad(x, ((0, 0), (0, 0), (0, 0), (1, 1)))         # (N, 3, H, Wp)
    xf = jnp.transpose(xpf, (1, 0, 2, 3)).reshape(Cin, L)
    xf = jnp.pad(xf, ((0, 0), (0, Lpad - L)))                  # (3, Lpad)

    # wa (8,3,1,3) -> (8, kw*3 + ci), matching cols_a row order (kw, ci)
    wa_mat = jnp.transpose(wa[:, :, 0, :], (0, 2, 1)).reshape(8, 3 * Cin)
    # wb (4,8,7,1) -> (4, kh*8 + cm), matching cols_b row order (kh, cm)
    wb_mat = jnp.transpose(wb[:, :, :, 0], (0, 2, 1)).reshape(4, 7 * 8)
    ba_col = ba.reshape(8, 1).astype(jnp.float32)
    bb_col = bb.reshape(4, 1).astype(jnp.float32)

    # width-pad mask for var1 (zeros at the two pad columns of every (n, h) row;
    # also zero over the Lpad tail, which only holds garbage anyway)
    row = jnp.concatenate([jnp.zeros((1,), jnp.float32),
                           jnp.ones((W,), jnp.float32),
                           jnp.zeros((1,), jnp.float32)])
    mask = jnp.pad(jnp.tile(row, N * H), (0, Lpad - L)).reshape(1, Lpad)

    # `other` broadcasts along width (period Wp on the flattened lane axis)
    oth = jnp.pad(jnp.tile(other.astype(jnp.float32), N * H),
                  (0, Lpad - L)).reshape(1, Lpad)

    kernel = _make_fused_kernel(Wp)
    out_flat = pl.pallas_call(
        kernel,
        out_shape=jax.ShapeDtypeStruct((4, Lpad), jnp.float32),
        # grid-less: a single kernel invocation, everything VMEM-resident;
        # constants DMA'd exactly once, one contiguous writeback DMA.
        in_specs=[pl.BlockSpec(memory_space=pltpu.MemorySpace.VMEM)] * 7,
        out_specs=pl.BlockSpec(memory_space=pltpu.MemorySpace.VMEM),
    )(xf, wa_mat, ba_col, mask, wb_mat, bb_col, oth)

    # Cheap wrapper-side extraction: drop lane padding and the (H - Hout)
    # garbage output rows per sample, then transpose to NCHW (~16 KB of data).
    out = out_flat[:, :L].reshape(4, N, H, Wp)[:, :, :Hout, :]
    return jnp.transpose(out, (1, 0, 2, 3))                    # (N, 4, Hout, Wout)


# ---------------- pure-JAX reference (for correctness check) ----------------

def _reference_forward(x, params, other):
    wa, ba, wb, bb = params
    v1 = jax.lax.conv_general_dilated(
        x, wa, window_strides=(1, 1), padding=((0, 0), (1, 1)),
        dimension_numbers=("NCHW", "OIHW", "NCHW"),
        precision=jax.lax.Precision.HIGHEST) + ba.reshape(1, -1, 1, 1)
    v2 = jax.lax.conv_general_dilated(
        v1, wb, window_strides=(1, 1), padding=((0, 0), (1, 1)),
        dimension_numbers=("NCHW", "OIHW", "NCHW"),
        precision=jax.lax.Precision.HIGHEST) + bb.reshape(1, -1, 1, 1)
    return v2 + other  # broadcasts along the last (width) axis, like torch


if __name__ == "__main__":
    key = jax.random.PRNGKey(0)
    kp, kx, ko = jax.random.split(key, 3)

    # Small shapes consistent with the module; N == W + 2 so the `+ other`
    # broadcast (trailing-dim aligned, i.e. along width) is legal.
    N, H, W = 10, 16, 8
    x = jax.random.normal(kx, (N, 3, H, W), jnp.float32)
    # TODO(synk): torch generates `other` with randn inside forward; here it is
    # taken as a deterministic explicit input instead of in-kernel RNG.
    other = jax.random.normal(ko, (N,), jnp.float32)

    params = init_params(kp)
    fwd = jax.jit(model_forward)
    out = jax.block_until_ready(fwd(x, params, other))

    assert out.shape == (N, 4, H - 6, W + 2), out.shape
    assert out.dtype == jnp.float32

    ref = _reference_forward(x, params, other)
    max_err = float(jnp.max(jnp.abs(out - ref)))
    assert jnp.allclose(out, ref, atol=1e-3, rtol=1e-3), max_err

    print("KERNEL_OK")
</pallas_src>

<mosaic_0001>
module attributes {stable_mosaic.version = 11 : i64} {
  func.func @kernel(%arg0: memref<3x1664xf32, #tpu.memory_space<vmem>>, %arg1: memref<8x9xf32, #tpu.memory_space<vmem>>, %arg2: memref<8x1xf32, #tpu.memory_space<vmem>>, %arg3: memref<1x1664xf32, #tpu.memory_space<vmem>>, %arg4: memref<4x56xf32, #tpu.memory_space<vmem>>, %arg5: memref<4x1xf32, #tpu.memory_space<vmem>>, %arg6: memref<1x1664xf32, #tpu.memory_space<vmem>>, %arg7: memref<4x1664xf32, #tpu.memory_space<vmem>>) attributes {dimension_semantics = [], scalar_prefetch = 0 : i64, scratch_operands = 0 : i64, tpu.core_type = #tpu.core_type<tc>} {
    %c0 = arith.constant 0 : index
    %c0_0 = arith.constant 0 : index
    %0 = vector.load %arg0[%c0, %c0_0] : memref<3x1664xf32, #tpu.memory_space<vmem>>, vector<3x1664xf32>
    %1 = vector.extract_strided_slice %0 {offsets = [0, 1663], sizes = [3, 1], strides = [1, 1]} : vector<3x1664xf32> to vector<3x1xf32>
    %2 = vector.extract_strided_slice %0 {offsets = [0, 0], sizes = [3, 1663], strides = [1, 1]} : vector<3x1664xf32> to vector<3x1663xf32>
    %3 = tpu.concatenate %1, %2 in 1 : vector<3x1xf32>, vector<3x1663xf32> -> vector<3x1664xf32>
    %4 = vector.extract_strided_slice %0 {offsets = [0, 1], sizes = [3, 1663], strides = [1, 1]} : vector<3x1664xf32> to vector<3x1663xf32>
    %5 = vector.extract_strided_slice %0 {offsets = [0, 0], sizes = [3, 1], strides = [1, 1]} : vector<3x1664xf32> to vector<3x1xf32>
    %6 = tpu.concatenate %4, %5 in 1 : vector<3x1663xf32>, vector<3x1xf32> -> vector<3x1664xf32>
    %7 = tpu.concatenate %3, %0, %6 in 0 : vector<3x1664xf32>, vector<3x1664xf32>, vector<3x1664xf32> -> vector<9x1664xf32>
    %c0_1 = arith.constant 0 : index
    %c0_2 = arith.constant 0 : index
    %8 = vector.load %arg1[%c0_1, %c0_2] : memref<8x9xf32, #tpu.memory_space<vmem>>, vector<8x9xf32>
    %cst = arith.constant dense<0.000000e+00> : vector<8x1664xf32>
    %9 = tpu.matmul %8, %7, %cst {dimension_numbers = #tpu.dot_dimension_numbers<[1], [0], [0], [1], [0, 0, 1, 1], [], []>} : vector<8x9xf32>, vector<9x1664xf32>, vector<8x1664xf32> -> vector<8x1664xf32>
    %c0_3 = arith.constant 0 : index
    %c0_4 = arith.constant 0 : index
    %10 = vector.load %arg2[%c0_3, %c0_4] : memref<8x1xf32, #tpu.memory_space<vmem>>, vector<8x1xf32>
    %11 = vector.broadcast %10 : vector<8x1xf32> to vector<8x1664xf32>
    %12 = arith.addf %9, %11 : vector<8x1664xf32>
    %c0_5 = arith.constant 0 : index
    %c0_6 = arith.constant 0 : index
    %13 = vector.load %arg3[%c0_5, %c0_6] : memref<1x1664xf32, #tpu.memory_space<vmem>>, vector<1x1664xf32>
    %14 = vector.broadcast %13 : vector<1x1664xf32> to vector<8x1664xf32>
    %15 = arith.mulf %12, %14 : vector<8x1664xf32>
    %16 = vector.extract_strided_slice %15 {offsets = [0, 10], sizes = [8, 1654], strides = [1, 1]} : vector<8x1664xf32> to vector<8x1654xf32>
    %17 = vector.extract_strided_slice %15 {offsets = [0, 0], sizes = [8, 10], strides = [1, 1]} : vector<8x1664xf32> to vector<8x10xf32>
    %18 = tpu.concatenate %16, %17 in 1 : vector<8x1654xf32>, vector<8x10xf32> -> vector<8x1664xf32>
    %19 = vector.extract_strided_slice %15 {offsets = [0, 20], sizes = [8, 1644], strides = [1, 1]} : vector<8x1664xf32> to vector<8x1644xf32>
    %20 = vector.extract_strided_slice %15 {offsets = [0, 0], sizes = [8, 20], strides = [1, 1]} : vector<8x1664xf32> to vector<8x20xf32>
    %21 = tpu.concatenate %19, %20 in 1 : vector<8x1644xf32>, vector<8x20xf32> -> vector<8x1664xf32>
    %22 = vector.extract_strided_slice %15 {offsets = [0, 30], sizes = [8, 1634], strides = [1, 1]} : vector<8x1664xf32> to vector<8x1634xf32>
    %23 = vector.extract_strided_slice %15 {offsets = [0, 0], sizes = [8, 30], strides = [1, 1]} : vector<8x1664xf32> to vector<8x30xf32>
    %24 = tpu.concatenate %22, %23 in 1 : vector<8x1634xf32>, vector<8x30xf32> -> vector<8x1664xf32>
    %25 = vector.extract_strided_slice %15 {offsets = [0, 40], sizes = [8, 1624], strides = [1, 1]} : vector<8x1664xf32> to vector<8x1624xf32>
    %26 = vector.extract_strided_slice %15 {offsets = [0, 0], sizes = [8, 40], strides = [1, 1]} : vector<8x1664xf32> to vector<8x40xf32>
    %27 = tpu.concatenate %25, %26 in 1 : vector<8x1624xf32>, vector<8x40xf32> -> vector<8x1664xf32>
    %28 = vector.extract_strided_slice %15 {offsets = [0, 50], sizes = [8, 1614], strides = [1, 1]} : vector<8x1664xf32> to vector<8x1614xf32>
    %29 = vector.extract_strided_slice %15 {offsets = [0, 0], sizes = [8, 50], strides = [1, 1]} : vector<8x1664xf32> to vector<8x50xf32>
    %30 = tpu.concatenate %28, %29 in 1 : vector<8x1614xf32>, vector<8x50xf32> -> vector<8x1664xf32>
    %31 = vector.extract_strided_slice %15 {offsets = [0, 60], sizes = [8, 1604], strides = [1, 1]} : vector<8x1664xf32> to vector<8x1604xf32>
    %32 = vector.extract_strided_slice %15 {offsets = [0, 0], sizes = [8, 60], strides = [1, 1]} : vector<8x1664xf32> to vector<8x60xf32>
    %33 = tpu.concatenate %31, %32 in 1 : vector<8x1604xf32>, vector<8x60xf32> -> vector<8x1664xf32>
    %34 = tpu.concatenate %15, %18, %21, %24, %27, %30, %33 in 0 : vector<8x1664xf32>, vector<8x1664xf32>, vector<8x1664xf32>, vector<8x1664xf32>, vector<8x1664xf32>, vector<8x1664xf32>, vector<8x1664xf32> -> vector<56x1664xf32>
    %c0_7 = arith.constant 0 : index
    %c0_8 = arith.constant 0 : index
    %35 = vector.load %arg4[%c0_7, %c0_8] : memref<4x56xf32, #tpu.memory_space<vmem>>, vector<4x56xf32>
    %cst_9 = arith.constant dense<0.000000e+00> : vector<4x1664xf32>
    %36 = tpu.matmul %35, %34, %cst_9 {dimension_numbers = #tpu.dot_dimension_numbers<[1], [0], [0], [1], [0, 0, 1, 1], [], []>} : vector<4x56xf32>, vector<56x1664xf32>, vector<4x1664xf32> -> vector<4x1664xf32>
    %c0_10 = arith.constant 0 : index
    %c0_11 = arith.constant 0 : index
    %37 = vector.load %arg5[%c0_10, %c0_11] : memref<4x1xf32, #tpu.memory_space<vmem>>, vector<4x1xf32>
    %38 = vector.broadcast %37 : vector<4x1xf32> to vector<4x1664xf32>
    %39 = arith.addf %36, %38 : vector<4x1664xf32>
    %c0_12 = arith.constant 0 : index
    %c0_13 = arith.constant 0 : index
    %40 = vector.load %arg6[%c0_12, %c0_13] : memref<1x1664xf32, #tpu.memory_space<vmem>>, vector<1x1664xf32>
    %41 = vector.broadcast %40 : vector<1x1664xf32> to vector<4x1664xf32>
    %42 = arith.addf %39, %41 : vector<4x1664xf32>
    %c0_14 = arith.constant 0 : index
    %c0_15 = arith.constant 0 : index
    %43 = vector.load %arg7[%c0_14, %c0_15] : memref<4x1664xf32, #tpu.memory_space<vmem>>, vector<4x1664xf32>
    tpu.vector_store %arg7[%c0_14, %c0_15], %42 {strides = array<i32>} : memref<4x1664xf32, #tpu.memory_space<vmem>>, vector<4x1664xf32>,
    return
  }
}

</mosaic_0001>

<bundles_post_ra>
// kernel: tile.16
= control target key start
LH: loop header
LB: loop body
LE: loop exit
PB: predicated region body
PF: predicated region fallthrough
CT: control target
= control target key end

     0   :  { %s136_s0 = inlined_call_operand.vmem [shape: f32[10], index: 0, kind: input, shape index: {}]   ;;  %s137_s1 = inlined_call_operand.vmem [shape: f32[160,10], index: 1, kind: output, shape index: {}]  }
   0x1   :  { %v4_v0 = vld [vmem:[%s136_s0] ss:$0 sm:$0xff] }
   0x2   :  { %5 = vst [vmem:[%s137_s1] sm:$0xff] %v4_v0 }
   0x3   :  { %44 = vst [vmem:[%s137_s1 + $0x8] sm:$0xff] %v4_v0 }
   0x4   :  { %45 = vst [vmem:[%s137_s1 + $0x10] sm:$0xff] %v4_v0 }
   0x5   :  { %46 = vst [vmem:[%s137_s1 + $0x18] sm:$0xff] %v4_v0 }
   0x6   :  { %47 = vst [vmem:[%s137_s1 + $0x20] sm:$0xff] %v4_v0 }
   0x7   :  { %48 = vst [vmem:[%s137_s1 + $0x28] sm:$0xff] %v4_v0 }
   0x8   :  { %49 = vst [vmem:[%s137_s1 + $0x30] sm:$0xff] %v4_v0 }
   0x9   :  { %50 = vst [vmem:[%s137_s1 + $0x38] sm:$0xff] %v4_v0 }
   0xa   :  { %51 = vst [vmem:[%s137_s1 + $0x40] sm:$0xff] %v4_v0 }
   0xb   :  { %52 = vst [vmem:[%s137_s1 + $0x48] sm:$0xff] %v4_v0 }
   0xc   :  { %53 = vst [vmem:[%s137_s1 + $0x50] sm:$0xff] %v4_v0 }
   0xd   :  { %54 = vst [vmem:[%s137_s1 + $0x58] sm:$0xff] %v4_v0 }
   0xe   :  { %55 = vst [vmem:[%s137_s1 + $0x60] sm:$0xff] %v4_v0 }
   0xf   :  { %56 = vst [vmem:[%s137_s1 + $0x68] sm:$0xff] %v4_v0 }
  0x10   :  { %57 = vst [vmem:[%s137_s1 + $0x70] sm:$0xff] %v4_v0 }
  0x11   :  { %58 = vst [vmem:[%s137_s1 + $0x78] sm:$0xff] %v4_v0 }
  0x12   :  { %59 = vst [vmem:[%s137_s1 + $0x80] sm:$0xff] %v4_v0 }
  0x13   :  { %60 = vst [vmem:[%s137_s1 + $0x88] sm:$0xff] %v4_v0 }
  0x14   :  { %61 = vst [vmem:[%s137_s1 + $0x90] sm:$0xff] %v4_v0 }
  0x15   :  { %62 = vst [vmem:[%s137_s1 + $0x98] sm:$0xff] %v4_v0 }

// kernel: tile.17
= control target key start
LH: loop header
LB: loop body
LE: loop exit
PB: predicated region body
PF: predicated region fallthrough
CT: control target
= control target key end

     0   :  { %vm5_vm0 = vcmask 1041409   ;;  %vm25_vm1 = vcmask 15360   ;;  %vm9_vm2 = vcmask 1042434   ;;  %vm51_vm3 = vcmask 48128   ;;  %s1157_s30 = smov 126   ;;  %s1158_s10 = smov 122   ;;  %s2057_s0 = inlined_call_operand.vmem [shape: f32[160,10], index: 0, kind: input, shape index: {}]   ;;  %s2058_s1 = inlined_call_operand.vmem [shape: f32[1600], index: 1, kind: output, shape index: {}]  }
   0x1   :  { %v872_v0 = vld [vmem:[%s2057_s0 + $0x33] sm:$0x1]   ;;  %v884_v5 = vld [vmem:[%s2057_s0 + $0x19] sm:$0x1]   ;;  %v878_v16 = vld [vmem:[%s2057_s0 + $0x26] sm:$0x1]  }
   0x2   :  { %v873_v1 = vld [vmem:[%s2057_s0 + $0x72] sm:$0x2]   ;;  %v885_v6 = vld [vmem:[%s2057_s0 + $0x58] sm:$0x2]   ;;  %v879_v17 = vld [vmem:[%s2057_s0 + $0x65] sm:$0x2]  }
   0x3   :  { %v874_v2 = vld [vmem:[%s2057_s0 + $0x33] sm:$0x1]   ;;  %v18_v3 = vsel %vm5_vm0, %v873_v1, %v872_v0  ;;  %v62_v8 = vsel %vm5_vm0, %v885_v6, %v884_v5  ;;  %v886_v9 = vld [vmem:[%s2057_s0 + $0x97] sm:$0x4]   ;;  %v880_v19 = vld [vmem:[%s2057_s0 + $0x26] sm:$0x1]   ;;  %v40_v24 = vsel %vm5_vm0, %v879_v17, %v878_v16 }
   0x4   :  { %v875_v4 = vld [vmem:[%s2057_s0 + $0x72] sm:$0x2]   ;;  %v887_v10 = vld [vmem:[%s2057_s0 + $0x19] sm:$0x1]   ;;  %v66_v13 = vsel %vm9_vm2, %v886_v9, %v62_v8  ;;  %v881_v20 = vld [vmem:[%s2057_s0 + $0x65] sm:$0x2]  }
   0x5   :  { %v24_v7 = vsel %vm5_vm0, %v875_v4, %v874_v2  ;;  %v888_v11 = vld [vmem:[%s2057_s0 + $0x58] sm:$0x2]   ;;  %vm47_vm4 = vcmask 31744   ;;  %v892_v22 = vld [vmem:[%s2057_s0 + $0xc] sm:$0x1]   ;;  %v46_v25 = vsel %vm5_vm0, %v881_v20, %v880_v19  ;;  %vm29_vm5 = vcmask 64512  }
   0x6   :  { %v26_v12 = vsel %vm25_vm1, %v24_v7, %v18_v3  ;;  %v72_v14 = vsel %vm5_vm0, %v888_v11, %v887_v10  ;;  %v889_v15 = vld [vmem:[%s2057_s0 + $0x97] sm:$0x4]   ;;  %v893_v23 = vld [vmem:[%s2057_s0 + $0x4b] sm:$0x2]   ;;  %v48_v34 = vsel %vm47_vm4, %v46_v25, %v40_v24  ;;  %v899_v35 = vld [vmem:[%s2057_s0 + $0x3f] sm:$0x1]  }
   0x7   :  { %27 = vrot.lane.b32.xlu0 %v26_v12, %s1157_s30  ;;  %v76_v18 = vsel %vm9_vm2, %v889_v15, %v72_v14  ;;  %v92_v26 = vsel %vm5_vm0, %v893_v23, %v892_v22  ;;  %v894_v27 = vld [vmem:[%s2057_s0 + $0x8a] sm:$0x4]   ;;  %v900_v36 = vld [vmem:[%s2057_s0 + $0x7e] sm:$0x2]   ;;  %s1159_s23 = smov 118   ;;  %s1160_s24 = smov 124  }
   0x8   :  { %v78_v21 = vsel %vm51_vm3, %v76_v18, %v66_v13  ;;  %v895_v28 = vld [vmem:[%s2057_s0 + $0xc] sm:$0x1]   ;;  %v96_v32 = vsel %vm9_vm2, %v894_v27, %v92_v26  ;;  %v121_v37 = vsel %vm5_vm0, %v900_v36, %v899_v35  ;;  %v908_v39 = vld [vmem:[%s2057_s0 + $0x18] sm:$0x1]   ;;  %v902_v41 = vld [vmem:[%s2057_s0 + $0x32] sm:$0x1]  }
   0x9   :  { %79 = vrot.lane.b32.xlu1 %v78_v21, %s1158_s10  ;;  %v896_v29 = vld [vmem:[%s2057_s0 + $0x4b] sm:$0x2]   ;;  %122 = vrot.lane.b32.xlu2 %v121_v37, %s1159_s23  ;;  %v909_v40 = vld [vmem:[%s2057_s0 + $0x57] sm:$0x2]   ;;  %s1161_s4 = smov 120   ;;  %s1162_s15 = smov 116  }
   0xa   :  { %v102_v30 = vsel %vm5_vm0, %v896_v29, %v895_v28  ;;  %v897_v31 = vld [vmem:[%s2057_s0 + $0x8a] sm:$0x4]   ;;  %v903_v42 = vld [vmem:[%s2057_s0 + $0x71] sm:$0x2]   ;;  %v905_v43 = vld [vmem:[%s2057_s0 + $0x25] sm:$0x1]   ;;  %v154_v45 = vsel %vm5_vm0, %v909_v40, %v908_v39 }
   0xb   :  { %v106_v33 = vsel %vm9_vm2, %v897_v31, %v102_v30  ;;  %v906_v44 = vld [vmem:[%s2057_s0 + $0x64] sm:$0x2]   ;;  %v910_v46 = vld [vmem:[%s2057_s0 + $0x96] sm:$0x4]   ;;  %v132_v47 = vsel %vm5_vm0, %v903_v42, %v902_v41  ;;  %v912_v49 = vld [vmem:[%s2057_s0 + $0xb] sm:$0x1]  }
   0xc   :  { %v108_v38 = vsel %vm29_vm5, %v106_v33, %v96_v32  ;;  %v143_v48 = vsel %vm5_vm0, %v906_v44, %v905_v43  ;;  %v913_v50 = vld [vmem:[%s2057_s0 + $0x4a] sm:$0x2]   ;;  %v158_v51 = vsel %vm9_vm2, %v910_v46, %v154_v45  ;;  %s1163_s16 = smov 114   ;;  %s1164_s19 = smov 112   ;;  %v915_v54 = vld [vmem:[%s2057_s0 + $0x3e] sm:$0x1]  }
   0xd   :  { %v169_v52 = vsel %vm5_vm0, %v913_v50, %v912_v49  ;;  %v914_v53 = vld [vmem:[%s2057_s0 + $0x89] sm:$0x4]   ;;  %v916_v55 = vld [vmem:[%s2057_s0 + $0x7d] sm:$0x2]   ;;  %v918_v56 = vld [vmem:[%s2057_s0 + $0x31] sm:$0x1]  }
   0xe   :  { %v919_v57 = vld [vmem:[%s2057_s0 + $0x70] sm:$0x2]   ;;  %v173_v58 = vsel %vm9_vm2, %v914_v53, %v169_v52  ;;  %v183_v59 = vsel %vm5_vm0, %v916_v55, %v915_v54  ;;  %v924_v61 = vld [vmem:[%s2057_s0 + $0x17] sm:$0x1]   ;;  %s1165_s3 = smov 110   ;;  %s1167_s13 = smov 106  }
   0xf   :  { %49 = vrot.lane.b32.xlu0 %v48_v34, %s1160_s24  ;;  %v194_v60 = vsel %vm5_vm0, %v919_v57, %v918_v56  ;;  %v925_v62 = vld [vmem:[%s2057_s0 + $0x56] sm:$0x2]   ;;  %v928_v63 = vld [vmem:[%s2057_s0 + $0xa] sm:$0x1]   ;;  %v921_v1 = vld [vmem:[%s2057_s0 + $0x24] sm:$0x1]  }
  0x10   :  { %v929_v0 = vld [vmem:[%s2057_s0 + $0x49] sm:$0x2]   ;;  %v922_v2 = vld [vmem:[%s2057_s0 + $0x63] sm:$0x2]   ;;  %v216_v3 = vsel %vm5_vm0, %v925_v62, %v924_v61  ;;  %v926_v4 = vld [vmem:[%s2057_s0 + $0x95] sm:$0x4]  }
  0x11   :  { %109 = vrot.lane.b32.xlu1 %v108_v38, %s1161_s4  ;;  %133 = vrot.lane.b32.xlu2 %v132_v47, %s1162_s15  ;;  %s1166_s4 = smov 108   ;;  %v231_v5 = vsel %vm5_vm0, %v929_v0, %v928_v63  ;;  %v930_v6 = vld [vmem:[%s2057_s0 + $0x88] sm:$0x4]   ;;  %v205_v7 = vsel %vm5_vm0, %v922_v2, %v921_v1  ;;  %v220_v8 = vsel %vm9_vm2, %v926_v4, %v216_v3  ;;  %s1168_s18 = smov 104   ;;  %v931_v10 = vld [vmem:[%s2057_s0 + $0x3d] sm:$0x1]  }
  0x12   :  { %v235_v9 = vsel %vm9_vm2, %v930_v6, %v231_v5  ;;  %v932_v11 = vld [vmem:[%s2057_s0 + $0x7c] sm:$0x2]   ;;  %s1170_s24 = smov 100   ;;  %v934_v12 = vld [vmem:[%s2057_s0 + $0x30] sm:$0x1]   ;;  %s1171_s12 = smov 98  }
  0x13   :  { %v935_v13 = vld [vmem:[%s2057_s0 + $0x6f] sm:$0x2]   ;;  %v937_v14 = vld [vmem:[%s2057_s0 + $0x23] sm:$0x1]   ;;  %v245_v16 = vsel %vm5_vm0, %v932_v11, %v931_v10  ;;  %v940_v18 = vld [vmem:[%s2057_s0 + $0x16] sm:$0x1]  }
  0x14   :  { %v938_v15 = vld [vmem:[%s2057_s0 + $0x62] sm:$0x2]   ;;  %v256_v17 = vsel %vm5_vm0, %v935_v13, %v934_v12  ;;  %v941_v19 = vld [vmem:[%s2057_s0 + $0x55] sm:$0x2]   ;;  %v944_v21 = vld [vmem:[%s2057_s0 + $0x9] sm:$0x1]  }
  0x15   :  { %v267_v20 = vsel %vm5_vm0, %v938_v15, %v937_v14  ;;  %v945_v22 = vld [vmem:[%s2057_s0 + $0x48] sm:$0x2]   ;;  %v278_v23 = vsel %vm5_vm0, %v941_v19, %v940_v18  ;;  %v942_v24 = vld [vmem:[%s2057_s0 + $0x94] sm:$0x4]   ;;  %v947_v27 = vld [vmem:[%s2057_s0 + $0x3c] sm:$0x1]  }
  0x16   :  { %v293_v25 = vsel %vm5_vm0, %v945_v22, %v944_v21  ;;  %v946_v26 = vld [vmem:[%s2057_s0 + $0x87] sm:$0x4]   ;;  %v948_v28 = vld [vmem:[%s2057_s0 + $0x7b] sm:$0x2]   ;;  %v282_v29 = vsel %vm9_vm2, %v942_v24, %v278_v23  ;;  %s1174_s23 = smov 92   ;;  %s1177_s15 = smov 86  }
  0x17   :  { %144 = vrot.lane.b32.xlu0 %v143_v48, %s1163_s16  ;;  %s1173_s16 = smov 94   ;;  %v297_v30 = vsel %vm9_vm2, %v946_v26, %v293_v25  ;;  %v307_v31 = vsel %vm5_vm0, %v948_v28, %v947_v27  ;;  %v956_v32 = vld [vmem:[%s2057_s0 + $0x15] sm:$0x1]   ;;  %v950_v34 = vld [vmem:[%s2057_s0 + $0x2f] sm:$0x1]   ;;  %s1189_s27 = smov 62  }
  0x18   :  { %v957_v33 = vld [vmem:[%s2057_s0 + $0x54] sm:$0x2]   ;;  %v951_v35 = vld [vmem:[%s2057_s0 + $0x6e] sm:$0x2]   ;;  %v953_v36 = vld [vmem:[%s2057_s0 + $0x22] sm:$0x1]  }
  0x19   :  { %159 = vrot.lane.b32.xlu1 %v158_v51, %s1164_s19  ;;  %174 = vrot.lane.b32.xlu2 %v173_v58, %s1165_s3  ;;  %s1169_s19 = smov 102   ;;  %v954_v37 = vld [vmem:[%s2057_s0 + $0x61] sm:$0x2]   ;;  %v340_v38 = vsel %vm5_vm0, %v957_v33, %v956_v32  ;;  %v958_v39 = vld [vmem:[%s2057_s0 + $0x93] sm:$0x4]   ;;  %v318_v40 = vsel %vm5_vm0, %v951_v35, %v950_v34  ;;  %s1180_s3 = smov 80  }
  0x1a   :  { %v329_v41 = vsel %vm5_vm0, %v954_v37, %v953_v36  ;;  %v960_v42 = vld [vmem:[%s2057_s0 + $0x8] sm:$0x1]   ;;  %v344_v44 = vsel %vm9_vm2, %v958_v39, %v340_v38  ;;  %v963_v47 = vld [vmem:[%s2057_s0 + $0x3b] sm:$0x1]   ;;  %v966_v49 = vld [vmem:[%s2057_s0 + $0x2e] sm:$0x1]  }
  0x1b   :  { %v961_v43 = vld [vmem:[%s2057_s0 + $0x47] sm:$0x2]   ;;  %v964_v48 = vld [vmem:[%s2057_s0 + $0x7a] sm:$0x2]   ;;  %v967_v50 = vld [vmem:[%s2057_s0 + $0x6d] sm:$0x2]  }
  0x1c   :  { %v355_v45 = vsel %vm5_vm0, %v961_v43, %v960_v42  ;;  %v962_v46 = vld [vmem:[%s2057_s0 + $0x86] sm:$0x4]   ;;  %v369_v52 = vsel %vm5_vm0, %v964_v48, %v963_v47  ;;  %v380_v53 = vsel %vm5_vm0, %v967_v50, %v966_v49  ;;  %v972_v54 = vld [vmem:[%s2057_s0 + $0x14] sm:$0x1]   ;;  %v976_v56 = vld [vmem:[%s2057_s0 + $0x7] sm:$0x1]  }
  0x1d   :  { %v359_v51 = vsel %vm9_vm2, %v962_v46, %v355_v45  ;;  %v973_v55 = vld [vmem:[%s2057_s0 + $0x53] sm:$0x2]   ;;  %v977_v57 = vld [vmem:[%s2057_s0 + $0x46] sm:$0x2]   ;;  %v969_v58 = vld [vmem:[%s2057_s0 + $0x21] sm:$0x1]  }
  0x1e   :  { %v974_v61 = vld [vmem:[%s2057_s0 + $0x92] sm:$0x4]   ;;  %v417_v62 = vsel %vm5_vm0, %v977_v57, %v976_v56  ;;  %v978_v63 = vld [vmem:[%s2057_s0 + $0x85] sm:$0x4]   ;;  %v979_v3 = vld [vmem:[%s2057_s0 + $0x3a] sm:$0x1]  }
  0x1f   :  { %184 = vrot.lane.b32.xlu0 %v183_v59, %s1166_s4  ;;  %s1176_s4 = smov 88   ;;  %v970_v59 = vld [vmem:[%s2057_s0 + $0x60] sm:$0x2]   ;;  %v421_v2 = vsel %vm9_vm2, %v978_v63, %v417_v62  ;;  %v980_v4 = vld [vmem:[%s2057_s0 + $0x79] sm:$0x2]   ;;  %s1190_s28 = smov 60  }
  0x20   :  { %v391_v0 = vsel %vm5_vm0, %v970_v59, %v969_v58  ;;  %v982_v5 = vld [vmem:[%s2057_s0 + $0x2d] sm:$0x1]   ;;  %v988_v11 = vld [vmem:[%s2057_s0 + $0x13] sm:$0x1]   ;;  %v992_v14 = vld [vmem:[%s2057_s0 + $0x6] sm:$0x1]  }
  0x21   :  { %195 = vrot.lane.b32.xlu1 %v194_v60, %s1167_s13  ;;  %206 = vrot.lane.b32.xlu2 %v205_v7, %s1168_s18  ;;  %s1172_s13 = smov 96   ;;  %v402_v60 = vsel %vm5_vm0, %v973_v55, %v972_v54  ;;  %s1183_s18 = smov 74   ;;  %v983_v6 = vld [vmem:[%s2057_s0 + $0x6c] sm:$0x2]   ;;  %v985_v7 = vld [vmem:[%s2057_s0 + $0x20] sm:$0x1]  }
  0x22   :  { %v406_v1 = vsel %vm9_vm2, %v974_v61, %v402_v60  ;;  %v442_v10 = vsel %vm5_vm0, %v983_v6, %v982_v5  ;;  %v989_v12 = vld [vmem:[%s2057_s0 + $0x52] sm:$0x2]   ;;  %v993_v15 = vld [vmem:[%s2057_s0 + $0x45] sm:$0x2]   ;;  %v996_v21 = vld [vmem:[%s2057_s0 + $0x78] sm:$0x2]  }
  0x23   :  { %v479_v18 = vsel %vm5_vm0, %v993_v15, %v992_v14  ;;  %v994_v19 = vld [vmem:[%s2057_s0 + $0x84] sm:$0x4]   ;;  %v1001_v25 = vld [vmem:[%s2057_s0 + $0x1f] sm:$0x1]   ;;  %v1005_v27 = vld [vmem:[%s2057_s0 + $0x12] sm:$0x1]  }
  0x24   :  { %v483_v23 = vsel %vm9_vm2, %v994_v19, %v479_v18  ;;  %v1002_v26 = vld [vmem:[%s2057_s0 + $0x5e] sm:$0x2]   ;;  %v1006_v28 = vld [vmem:[%s2057_s0 + $0x51] sm:$0x2]   ;;  %s1191_s8 = smov 58   ;;  %vm11_vm6 = vcmask 80896  }
  0x25   :  { %v1003_v32 = vld [vmem:[%s2057_s0 + $0x9d] sm:$0x4]   ;;  %v2_v33 = vld [vmem:[%s2057_s0] sm:$0x1]   ;;  %v530_v37 = vsel %vm5_vm0, %v1006_v28, %v1005_v27  ;;  %v1007_v38 = vld [vmem:[%s2057_s0 + $0x90] sm:$0x4]  }
  0x26   :  { %v870_v34 = vld [vmem:[%s2057_s0 + $0x3f] sm:$0x2]   ;;  %v1009_v42 = vld [vmem:[%s2057_s0 + $0x5] sm:$0x1]   ;;  %s1192_s25 = smov 56   ;;  %s1193_s26 = smov 54  }
  0x27   :  { %221 = vrot.lane.b32.xlu0 %v220_v8, %s1169_s19  ;;  %s1179_s19 = smov 82   ;;  %v986_v8 = vld [vmem:[%s2057_s0 + $0x5f] sm:$0x2]   ;;  %v6_v35 = vsel %vm5_vm0, %v870_v34, %v2_v33  ;;  %v1010_v43 = vld [vmem:[%s2057_s0 + $0x44] sm:$0x2]   ;;  %s1194_s29 = smov 52  }
  0x28   :  { %v453_v13 = vsel %vm5_vm0, %v986_v8, %v985_v7  ;;  %v871_v36 = vld [vmem:[%s2057_s0 + $0x7e] sm:$0x4]   ;;  %v545_v46 = vsel %vm5_vm0, %v1010_v43, %v1009_v42  ;;  %v1011_v47 = vld [vmem:[%s2057_s0 + $0x83] sm:$0x4]   ;;  %v1012_v48 = vld [vmem:[%s2057_s0 + $0x38] sm:$0x1]  }
  0x29   :  { %236 = vrot.lane.b32.xlu1 %v235_v9, %s1170_s24  ;;  %246 = vrot.lane.b32.xlu2 %v245_v16, %s1171_s12  ;;  %s1175_s24 = smov 90   ;;  %v431_v9 = vsel %vm5_vm0, %v980_v4, %v979_v3  ;;  %s1186_s12 = smov 68   ;;  %v464_v16 = vsel %vm5_vm0, %v989_v12, %v988_v11  ;;  %v1013_v49 = vld [vmem:[%s2057_s0 + $0x77] sm:$0x2]   ;;  %v1015_v50 = vld [vmem:[%s2057_s0 + $0x2b] sm:$0x1]  }
  0x2a   :  { %v1018_v54 = vld [vmem:[%s2057_s0 + $0x1e] sm:$0x1]   ;;  %v1022_v57 = vld [vmem:[%s2057_s0 + $0x11] sm:$0x1]   ;;  %s1195_s17 = smov 50   ;;  %s1198_s30 = smov 44  }
  0x2b   :  { %v1019_v55 = vld [vmem:[%s2057_s0 + $0x5d] sm:$0x2]   ;;  %v1023_v58 = vld [vmem:[%s2057_s0 + $0x50] sm:$0x2]   ;;  %v1026_v59 = vld [vmem:[%s2057_s0 + $0x4] sm:$0x1]  }
  0x2c   :  { %v1027_v60 = vld [vmem:[%s2057_s0 + $0x43] sm:$0x2]   ;;  %v581_v62 = vsel %vm5_vm0, %v1019_v55, %v1018_v54  ;;  %v1020_v63 = vld [vmem:[%s2057_s0 + $0x9c] sm:$0x4]   ;;  %s1199_s2 = smov 42   ;;  %vm32_vm7 = vcmask 1048560  }
  0x2d   :  { %v1028_v3 = vld [vmem:[%s2057_s0 + $0x82] sm:$0x4]   ;;  %v585_v4 = vsel %vm9_vm2, %v1020_v63, %v581_v62  ;;  %v1035_v7 = vld [vmem:[%s2057_s0 + $0x1d] sm:$0x1]   ;;  %v1030_v11 = vld [vmem:[%s2057_s0 + $0x76] sm:$0x2]  }
  0x2e   :  { %v1036_v8 = vld [vmem:[%s2057_s0 + $0x5c] sm:$0x2]   ;;  %s1200_s11 = smov 40   ;;  %vm124_vm8 = vcmask 1048496   ;;  %v1033_v14 = vld [vmem:[%s2057_s0 + $0x69] sm:$0x2]  }
  0x2f   :  { %257 = vrot.lane.b32.xlu0 %v256_v17, %s1172_s13  ;;  %s1182_s13 = smov 76   ;;  %v990_v17 = vld [vmem:[%s2057_s0 + $0x91] sm:$0x4]   ;;  %vm84_vm9 = vcmask 1048528   ;;  %s1201_s5 = smov 38   ;;  %vm54_vm10 = vcmask 1048544  }
  0x30   :  { %v468_v22 = vsel %vm9_vm2, %v990_v17, %v464_v16  ;;  %v647_v16 = vsel %vm5_vm0, %v1036_v8, %v1035_v7  ;;  %v1037_v17 = vld [vmem:[%s2057_s0 + $0x9b] sm:$0x4]   ;;  %s1202_s6 = smov 36   ;;  %v1041_v27 = vld [vmem:[%s2057_s0 + $0x8e] sm:$0x4]   ;;  %s1203_s9 = smov 34  }
  0x31   :  { %268 = vrot.lane.b32.xlu1 %v267_v20, %s1173_s16  ;;  %283 = vrot.lane.b32.xlu2 %v282_v29, %s1174_s23  ;;  %s1178_s16 = smov 84   ;;  %v995_v20 = vld [vmem:[%s2057_s0 + $0x39] sm:$0x1]   ;;  %v998_v29 = vld [vmem:[%s2057_s0 + $0x2c] sm:$0x1]   ;;  %vm135_vm11 = vcmask 1032096  }
  0x32   :  { %v493_v24 = vsel %vm5_vm0, %v996_v21, %v995_v20  ;;  %v1039_v20 = vld [vmem:[%s2057_s0 + $0x10] sm:$0x1]   ;;  %v1047_v33 = vld [vmem:[%s2057_s0 + $0x75] sm:$0x2]   ;;  %vm114_vm12 = vcmask 1048512   ;;  %vm176_vm13 = vcmask 982896  }
  0x33   :  { %v1040_v21 = vld [vmem:[%s2057_s0 + $0x4f] sm:$0x2]   ;;  %vm146_vm14 = vcmask 1015696   ;;  %vm208_vm15 = vcmask 933696   ;;  %v1050_v43 = vld [vmem:[%s2057_s0 + $0x68] sm:$0x2]  }
  0x34   :  { %v1067_v63 = vld [vmem:[%s2057_s0 + $0x67] sm:$0x2]   ;;  %v1077_v7 = vld [vmem:[%s2057_s0 + $0x1] sm:$0x1]   ;;  %s1212_s7 = smov 16  }
  0x35   :  { %v1078_v8 = vld [vmem:[%s2057_s0 + $0x40] sm:$0x2]  }
  0x37   :  { %298 = vrot.lane.b32.xlu0 %v297_v30, %s1175_s24  ;;  %s1185_s24 = smov 70   ;;  %v999_v30 = vld [vmem:[%s2057_s0 + $0x6b] sm:$0x2]  }
  0x38   :  { %v504_v39 = vsel %vm5_vm0, %v999_v30, %v998_v29  ;;  %v1045_v30 = vld [vmem:[%s2057_s0 + $0x81] sm:$0x4]  }
  0x39   :  { %308 = vrot.lane.b32.xlu1 %v307_v31, %s1176_s4  ;;  %319 = vrot.lane.b32.xlu2 %v318_v40, %s1177_s15  ;;  %s1181_s4 = smov 78   ;;  %v515_v31 = vsel %vm5_vm0, %v1002_v26, %v1001_v25  ;;  %v10_v40 = vsel %vm9_vm2, %v871_v36, %v6_v35  ;;  %v662_v26 = vsel %vm5_vm0, %v1040_v21, %v1039_v20  ;;  %v1052_v36 = vld [vmem:[%s2057_s0 + $0x1c] sm:$0x1]   ;;  %s1206_s15 = smov 28   ;;  %v1086_v21 = vld [vmem:[%s2057_s0 + $0x1a] sm:$0x1]  }
  0x3a   :  { %12 = vst.msk [vmem:[%s2058_s1] ss:$5 sm:$0x7] %vm11_vm6, %v10_v40   ;;  %v666_v34 = vsel %vm9_vm2, %v1041_v27, %v662_v26  ;;  %v1053_v40 = vld [vmem:[%s2057_s0 + $0x5b] sm:$0x2]   ;;  %vm223_vm6 = vcmask 917296  }
  0x3b   :  { %v1083_v27 = vld [vmem:[%s2057_s0 + $0x27] sm:$0x1]  }
  0x3f   :  { %330 = vrot.lane.b32.xlu0 %v329_v41, %s1178_s16  ;;  %s1188_s16 = smov 64   ;;  %v519_v41 = vsel %vm9_vm2, %v1003_v32, %v515_v31  ;;  %v1046_v31 = vld [vmem:[%s2057_s0 + $0x36] sm:$0x1]  }
  0x41   :  { %345 = vrot.lane.b32.xlu1 %v344_v44, %s1179_s19  ;;  %360 = vrot.lane.b32.xlu2 %v359_v51, %s1180_s3  ;;  %s1184_s19 = smov 72   ;;  %v534_v44 = vsel %vm9_vm2, %v1007_v38, %v530_v37  ;;  %v1016_v51 = vld [vmem:[%s2057_s0 + $0x6a] sm:$0x2]   ;;  %v691_v37 = vsel %vm5_vm0, %v1047_v33, %v1046_v31  ;;  %v1056_v38 = vld [vmem:[%s2057_s0 + $0xf] sm:$0x1]  }
  0x42   :  { %v570_v56 = vsel %vm5_vm0, %v1016_v51, %v1015_v50  ;;  %v1088_v31 = vld [vmem:[%s2057_s0 + $0x98] sm:$0x4]  }
  0x47   :  { %370 = vrot.lane.b32.xlu0 %v369_v52, %s1181_s4  ;;  %v549_v52 = vsel %vm9_vm2, %v1011_v47, %v545_v46  ;;  %v1054_v46 = vld [vmem:[%s2057_s0 + $0x9a] sm:$0x4]  }
  0x49   :  { %381 = vrot.lane.b32.xlu1 %v380_v53, %s1182_s13  ;;  %392 = vrot.lane.b32.xlu2 %v391_v0, %s1183_s18  ;;  %s1187_s13 = smov 66   ;;  %v559_v53 = vsel %vm5_vm0, %v1013_v49, %v1012_v48  ;;  %s1196_s18 = smov 48   ;;  %v596_v0 = vsel %vm5_vm0, %v1023_v58, %v1022_v57  ;;  %v1058_v49 = vld [vmem:[%s2057_s0 + $0x8d] sm:$0x4]   ;;  %v1062_v57 = vld [vmem:[%s2057_s0 + $0x80] sm:$0x4]  }
  0x4f   :  { %407 = vrot.lane.b32.xlu0 %v406_v1, %s1184_s19  ;;  %v1024_v1 = vld [vmem:[%s2057_s0 + $0x8f] sm:$0x4]   ;;  %s1214_s19 = smov 12  }
  0x50   :  { %v600_v5 = vsel %vm9_vm2, %v1024_v1, %v596_v0 }
  0x51   :  { %422 = vrot.lane.b32.xlu1 %v421_v2, %s1185_s24  ;;  %432 = vrot.lane.b32.xlu2 %v431_v9, %s1186_s12  ;;  %v611_v2 = vsel %vm5_vm0, %v1027_v60, %v1026_v59  ;;  %v1063_v59 = vld [vmem:[%s2057_s0 + $0x35] sm:$0x1]  }
  0x52   :  { %v615_v6 = vsel %vm9_vm2, %v1028_v3, %v611_v2  ;;  %v1064_v60 = vld [vmem:[%s2057_s0 + $0x74] sm:$0x2]   ;;  %v1069_v2 = vld [vmem:[%s2057_s0 + $0x1b] sm:$0x1]  }
  0x53   :  { %v757_v1 = vsel %vm5_vm0, %v1064_v60, %v1063_v59  ;;  %v1070_v3 = vld [vmem:[%s2057_s0 + $0x5a] sm:$0x2]  }
  0x57   :  { %443 = vrot.lane.b32.xlu0 %v442_v10, %s1187_s13  ;;  %v1029_v10 = vld [vmem:[%s2057_s0 + $0x37] sm:$0x1]  }
  0x58   :  { %v625_v18 = vsel %vm5_vm0, %v1030_v11, %v1029_v10  ;;  %v779_v10 = vsel %vm5_vm0, %v1070_v3, %v1069_v2  ;;  %v1071_v11 = vld [vmem:[%s2057_s0 + $0x99] sm:$0x4]  }
  0x59   :  { %454 = vrot.lane.b32.xlu1 %v453_v13, %s1188_s16  ;;  %469 = vrot.lane.b32.xlu2 %v468_v22, %s1189_s27  ;;  %v1032_v13 = vld [vmem:[%s2057_s0 + $0x2a] sm:$0x1]   ;;  %v651_v22 = vsel %vm9_vm2, %v1037_v17, %v647_v16  ;;  %v809_v16 = vsel %vm5_vm0, %v1078_v8, %v1077_v7  ;;  %v1079_v17 = vld [vmem:[%s2057_s0 + $0x7f] sm:$0x4]   ;;  %s1216_s16 = smov 8  }
  0x5a   :  { %v636_v19 = vsel %vm5_vm0, %v1033_v14, %v1032_v13  ;;  %v1075_v14 = vld [vmem:[%s2057_s0 + $0x8c] sm:$0x4]   ;;  %v813_v20 = vsel %vm9_vm2, %v1079_v17, %v809_v16 }
  0x5f   :  { %484 = vrot.lane.b32.xlu0 %v483_v23, %s1190_s28  ;;  %v1043_v23 = vld [vmem:[%s2057_s0 + $0x3] sm:$0x1]   ;;  %s1210_s28 = smov 20  }
  0x61   :  { %494 = vrot.lane.b32.xlu1 %v493_v24, %s1191_s8  ;;  %505 = vrot.lane.b32.xlu2 %v504_v39, %s1192_s25  ;;  %s1197_s25 = smov 46   ;;  %v1044_v24 = vld [vmem:[%s2057_s0 + $0x42] sm:$0x2]   ;;  %v1057_v39 = vld [vmem:[%s2057_s0 + $0x4e] sm:$0x2]   ;;  %s1205_s8 = smov 30  }
  0x62   :  { %v677_v29 = vsel %vm5_vm0, %v1044_v24, %v1043_v23  ;;  %v728_v48 = vsel %vm5_vm0, %v1057_v39, %v1056_v38  ;;  %v1080_v24 = vld [vmem:[%s2057_s0 + $0x34] sm:$0x1]   ;;  %v1092_v39 = vld [vmem:[%s2057_s0 + $0x8b] sm:$0x4]  }
  0x63   :  { %v123_v45 = vpop.permute.xlu2 %122   ;;  %v681_v35 = vsel %vm9_vm2, %v1045_v30, %v677_v29  ;;  %v732_v54 = vsel %vm9_vm2, %v1058_v49, %v728_v48 }
  0x67   :  { %520 = vrot.lane.b32.xlu0 %v519_v41, %s1193_s26  ;;  %v1049_v41 = vld [vmem:[%s2057_s0 + $0x29] sm:$0x1]   ;;  %s1219_s26 = smov 2  }
  0x68   :  { %v702_v50 = vsel %vm5_vm0, %v1050_v43, %v1049_v41 }
  0x69   :  { %535 = vrot.lane.b32.xlu1 %v534_v44, %s1194_s29  ;;  %550 = vrot.lane.b32.xlu2 %v549_v52, %s1195_s17  ;;  %v1060_v52 = vld [vmem:[%s2057_s0 + $0x2] sm:$0x1]   ;;  %s1211_s29 = smov 18   ;;  %s1217_s17 = smov 6  }
  0x6b   :  { %v1657_v61 = vpop.permute.xlu2 %133  }
  0x6f   :  { %560 = vrot.lane.b32.xlu0 %v559_v53, %s1196_s18  ;;  %v1061_v53 = vld [vmem:[%s2057_s0 + $0x41] sm:$0x2]   ;;  %s1213_s18 = smov 14  }
  0x71   :  { %571 = vrot.lane.b32.xlu1 %v570_v56, %s1197_s25  ;;  %586 = vrot.lane.b32.xlu2 %v585_v4, %s1198_s30  ;;  %s1207_s30 = smov 26   ;;  %v743_v56 = vsel %vm5_vm0, %v1061_v53, %v1060_v52 }
  0x72   :  { %v747_v0 = vsel %vm9_vm2, %v1062_v57, %v743_v56 }
  0x73   :  { %v175_v9 = vpop.permute.xlu2 %174  }
  0x77   :  { %601 = vrot.lane.b32.xlu0 %v600_v5, %s1199_s2  ;;  %s1208_s2 = smov 24   ;;  %v1073_v5 = vld [vmem:[%s2057_s0 + $0xe] sm:$0x1]  }
  0x79   :  { %616 = vrot.lane.b32.xlu1 %v615_v6, %s1200_s11  ;;  %v28_v12 = vpop.permute.xlu0 %27   ;;  %626 = vrot.lane.b32.xlu2 %v625_v18, %s1201_s5  ;;  %s1204_s5 = smov 32   ;;  %v1074_v6 = vld [vmem:[%s2057_s0 + $0x4d] sm:$0x2]   ;;  %v783_v18 = vsel %vm9_vm2, %v1071_v11, %v779_v10 }
  0x7a   :  { %876 = vst.msk [vmem:[%s2058_s1 + $0x4] ss:$5 sm:$0x3] %vm29_vm5, %v28_v12   ;;  %vm197_vm5 = vcmask 950096   ;;  %v794_v13 = vsel %vm5_vm0, %v1074_v6, %v1073_v5 }
  0x7b   :  { %877 = vst.msk [vmem:[%s2058_s1 + $0x3] ss:$5 sm:$0x3] %vm32_vm7, %v28_v12   ;;  %v80_v15 = vpop.permute.xlu1 %79   ;;  %v207_v25 = vpop.permute.xlu2 %206   ;;  %vm285_vm7 = vcmask 835296  }
  0x7c   :  { %901 = vst.msk [vmem:[%s2058_s1 + $0x4] ss:$5 sm:$0x3] %vm124_vm8, %v123_v45   ;;  %v713_v45 = vsel %vm5_vm0, %v1053_v40, %v1052_v36  ;;  %vm238_vm8 = vcmask 900896  }
  0x7d   :  { %891 = vst.msk [vmem:[%s2058_s1 + $0x1] ss:$5 sm:$0x7] %vm84_vm9, %v80_v15   ;;  %v717_v51 = vsel %vm9_vm2, %v1054_v46, %v713_v45  ;;  %vm259_vm9 = vcmask 868096  }
  0x7f   :  { %637 = vrot.lane.b32.xlu0 %v636_v19, %s1202_s6  ;;  %v798_v19 = vsel %vm9_vm2, %v1075_v14, %v794_v13 }
  0x81   :  { %652 = vrot.lane.b32.xlu1 %v651_v22, %s1203_s9  ;;  %v50_v28 = vpop.permute.xlu0 %49   ;;  %667 = vrot.lane.b32.xlu2 %v666_v34, %s1204_s5  ;;  %s1209_s5 = smov 22   ;;  %v1087_v22 = vld [vmem:[%s2057_s0 + $0x59] sm:$0x2]   ;;  %v1090_v34 = vld [vmem:[%s2057_s0 + $0xd] sm:$0x1]  }
  0x82   :  { %882 = vst.msk [vmem:[%s2058_s1 + $0x3] ss:$5 sm:$0x3] %vm51_vm3, %v50_v28   ;;  %vm186_vm3 = vcmask 966496   ;;  %v845_v30 = vsel %vm5_vm0, %v1087_v22, %v1086_v21 }
  0x83   :  { %883 = vst.msk [vmem:[%s2058_s1 + $0x2] ss:$5 sm:$0x3] %vm54_vm10, %v50_v28   ;;  %v110_v32 = vpop.permute.xlu1 %109   ;;  %v247_v42 = vpop.permute.xlu2 %246   ;;  %vm321_vm10 = vcmask 786096   ;;  %v1084_v28 = vld [vmem:[%s2057_s0 + $0x66] sm:$0x2]   ;;  %v849_v36 = vsel %vm9_vm2, %v1088_v31, %v845_v30 }
  0x84   :  { %890 = vst.msk [vmem:[%s2058_s1 + $0x2] ss:$5 sm:$0x7] %vm47_vm4, %v80_v15   ;;  %vm248_vm4 = vcmask 884496   ;;  %v834_v33 = vsel %vm5_vm0, %v1084_v28, %v1083_v27 }
  0x85   :  { %904 = vst.msk [vmem:[%s2058_s1 + $0x3] ss:$5 sm:$0x3] %vm135_vm11, %v1657_v61   ;;  %v1066_v61 = vld [vmem:[%s2057_s0 + $0x28] sm:$0x1]   ;;  %vm270_vm11 = vcmask 851696  }
  0x86   :  { %898 = vst.msk [vmem:[%s2058_s1 + $0x1] ss:$5 sm:$0x7] %vm25_vm1, %v110_v32   ;;  %vm161_vm1 = vcmask 999296   ;;  %v768_v4 = vsel %vm5_vm0, %v1067_v63, %v1066_v61 }
  0x87   :  { %115 = vst.msk [vmem:[%s2058_s1] ss:$5 sm:$0x7] %vm114_vm12, %v110_v32   ;;  %682 = vrot.lane.b32.xlu0 %v681_v35, %s1205_s8  ;;  %v1091_v35 = vld [vmem:[%s2057_s0 + $0x4c] sm:$0x2]   ;;  %vm300_vm12 = vcmask 818896  }
  0x88   :  { %177 = vst.msk [vmem:[%s2058_s1] ss:$5 sm:$0x7] %vm176_vm13, %v175_v9   ;;  %vm362_vm13 = vcmask 736896   ;;  %v860_v38 = vsel %vm5_vm0, %v1091_v35, %v1090_v34 }
  0x89   :  { %692 = vrot.lane.b32.xlu1 %v691_v37, %s1206_s15  ;;  %v145_v44 = vpop.permute.xlu0 %144   ;;  %703 = vrot.lane.b32.xlu2 %v702_v50, %s1207_s30 }
  0x8a   :  { %907 = vst.msk [vmem:[%s2058_s1 + $0x2] ss:$5 sm:$0x3] %vm146_vm14, %v145_v44   ;;  %vm394_vm14 = vcmask 687696  }
  0x8b   :  { %v160_v47 = vpop.permute.xlu1 %159   ;;  %923 = vst.msk [vmem:[%s2058_s1 + $0x2] ss:$5 sm:$0x3] %vm208_vm15, %v207_v25   ;;  %v284_v55 = vpop.permute.xlu2 %283   ;;  %v1081_v25 = vld [vmem:[%s2057_s0 + $0x73] sm:$0x2]   ;;  %s1218_s0 = smov 4  }
  0x8c   :  { %911 = vst.msk [vmem:[%s2058_s1 + $0x1] ss:$5 sm:$0x7] %vm161_vm1, %v160_v47   ;;  %v823_v32 = vsel %vm5_vm0, %v1081_v25, %v1080_v24  ;;  %vm310_vm0 = vcmask 802496   ;;  %vm347_vm15 = vcmask 753296   ;;  %vm372_vm1 = vcmask 720496  }
  0x8f   :  { %718 = vrot.lane.b32.xlu0 %v717_v51, %s1208_s2 }
  0x91   :  { %733 = vrot.lane.b32.xlu1 %v732_v54, %s1209_s5  ;;  %v185_v58 = vpop.permute.xlu0 %184   ;;  %748 = vrot.lane.b32.xlu2 %v747_v0, %s1210_s28  ;;  %s1215_s28 = smov 10  }
  0x92   :  { %917 = vst.msk [vmem:[%s2058_s1 + $0x4] ss:$5 sm:$0x3] %vm186_vm3, %v185_v58   ;;  %vm434_vm3 = vcmask 638496  }
  0x93   :  { %v196_v62 = vpop.permute.xlu1 %195   ;;  %933 = vst.msk [vmem:[%s2058_s1 + $0x4] ss:$5 sm:$0x3] %vm248_vm4, %v247_v42   ;;  %v320_v9 = vpop.permute.xlu2 %319   ;;  %v864_v42 = vsel %vm9_vm2, %v1092_v39, %v860_v38  ;;  %vm332_vm2 = vcmask 769696   ;;  %vm383_vm4 = vcmask 704096  }
  0x94   :  { %920 = vst.msk [vmem:[%s2058_s1 + $0x3] ss:$5 sm:$0x3] %vm197_vm5, %v196_v62   ;;  %vm409_vm5 = vcmask 671296  }
  0x97   :  { %758 = vrot.lane.b32.xlu0 %v757_v1, %s1211_s29 }
  0x99   :  { %769 = vrot.lane.b32.xlu1 %v768_v4, %s1212_s7  ;;  %v222_v12 = vpop.permute.xlu0 %221   ;;  %784 = vrot.lane.b32.xlu2 %v783_v18, %s1213_s18 }
  0x9a   :  { %927 = vst.msk [vmem:[%s2058_s1 + $0x1] ss:$5 sm:$0x7] %vm223_vm6, %v222_v12   ;;  %vm471_vm6 = vcmask 589296  }
  0x9b   :  { %v237_v15 = vpop.permute.xlu1 %236   ;;  %943 = vst.msk [vmem:[%s2058_s1 + $0x1] ss:$5 sm:$0x7] %vm285_vm7, %v284_v55   ;;  %v361_v23 = vpop.permute.xlu2 %360   ;;  %vm424_vm7 = vcmask 654896  }
  0x9c   :  { %239 = vst.msk [vmem:[%s2058_s1] ss:$5 sm:$0x7] %vm238_vm8, %v237_v15   ;;  %vm445_vm8 = vcmask 622096  }
  0x9f   :  { %799 = vrot.lane.b32.xlu0 %v798_v19, %s1214_s19 }
  0xa1   :  { %814 = vrot.lane.b32.xlu1 %v813_v20, %s1215_s28  ;;  %v258_v26 = vpop.permute.xlu0 %257   ;;  %824 = vrot.lane.b32.xlu2 %v823_v32, %s1216_s16 }
  0xa2   :  { %936 = vst.msk [vmem:[%s2058_s1 + $0x3] ss:$5 sm:$0x3] %vm259_vm9, %v258_v26   ;;  %vm507_vm9 = vcmask 540096  }
  0xa3   :  { %v269_v29 = vpop.permute.xlu1 %268   ;;  %952 = vst.msk [vmem:[%s2058_s1 + $0x3] ss:$5 sm:$0x3] %vm321_vm10, %v320_v9   ;;  %v393_v37 = vpop.permute.xlu2 %392   ;;  %vm456_vm10 = vcmask 605696  }
  0xa4   :  { %939 = vst.msk [vmem:[%s2058_s1 + $0x2] ss:$5 sm:$0x3] %vm270_vm11, %v269_v29   ;;  %vm486_vm11 = vcmask 572896  }
  0xa7   :  { %835 = vrot.lane.b32.xlu0 %v834_v33, %s1217_s17 }
  0xa9   :  { %850 = vrot.lane.b32.xlu1 %v849_v36, %s1218_s0  ;;  %v299_v40 = vpop.permute.xlu0 %298   ;;  %865 = vrot.lane.b32.xlu2 %v864_v42, %s1219_s26 }
  0xaa   :  { %301 = vst.msk [vmem:[%s2058_s1] ss:$5 sm:$0x7] %vm300_vm12, %v299_v40   ;;  %vm552_vm12 = vcmask 490896  }
  0xab   :  { %v309_v41 = vpop.permute.xlu1 %308   ;;  %363 = vst.msk [vmem:[%s2058_s1] ss:$5 sm:$0x7] %vm362_vm13, %v361_v23   ;;  %v433_v43 = vpop.permute.xlu2 %432   ;;  %vm496_vm13 = vcmask 556496  }
  0xac   :  { %949 = vst.msk [vmem:[%s2058_s1 + $0x4] ss:$5 sm:$0x3] %vm310_vm0, %v309_v41   ;;  %vm522_vm0 = vcmask 523696  }
  0xb1   :  { %v331_v44 = vpop.permute.xlu0 %330  }
  0xb2   :  { %955 = vst.msk [vmem:[%s2058_s1 + $0x2] ss:$5 sm:$0x3] %vm332_vm2, %v331_v44   ;;  %vm588_vm2 = vcmask 441696  }
  0xb3   :  { %v346_v45 = vpop.permute.xlu1 %345   ;;  %971 = vst.msk [vmem:[%s2058_s1 + $0x2] ss:$5 sm:$0x3] %vm394_vm14, %v393_v37   ;;  %v470_v46 = vpop.permute.xlu2 %469   ;;  %vm537_vm14 = vcmask 507296  }
  0xb4   :  { %959 = vst.msk [vmem:[%s2058_s1 + $0x1] ss:$5 sm:$0x7] %vm347_vm15, %v346_v45   ;;  %vm562_vm15 = vcmask 474496  }
  0xb9   :  { %v371_v47 = vpop.permute.xlu0 %370  }
  0xba   :  { %965 = vst.msk [vmem:[%s2058_s1 + $0x4] ss:$5 sm:$0x3] %vm372_vm1, %v371_v47   ;;  %vm628_vm1 = vcmask 392496  }
  0xbb   :  { %v382_v48 = vpop.permute.xlu1 %381   ;;  %981 = vst.msk [vmem:[%s2058_s1 + $0x4] ss:$5 sm:$0x3] %vm434_vm3, %v433_v43   ;;  %v506_v49 = vpop.permute.xlu2 %505   ;;  %vm573_vm3 = vcmask 458096  }
  0xbc   :  { %968 = vst.msk [vmem:[%s2058_s1 + $0x3] ss:$5 sm:$0x3] %vm383_vm4, %v382_v48   ;;  %vm603_vm4 = vcmask 425296  }
  0xc1   :  { %v408_v50 = vpop.permute.xlu0 %407  }
  0xc2   :  { %975 = vst.msk [vmem:[%s2058_s1 + $0x1] ss:$5 sm:$0x7] %vm409_vm5, %v408_v50   ;;  %vm669_vm5 = vcmask 343296  }
  0xc3   :  { %v423_v51 = vpop.permute.xlu1 %422   ;;  %991 = vst.msk [vmem:[%s2058_s1 + $0x1] ss:$5 sm:$0x7] %vm471_vm6, %v470_v46   ;;  %v551_v52 = vpop.permute.xlu2 %550   ;;  %vm618_vm6 = vcmask 408896  }
  0xc4   :  { %425 = vst.msk [vmem:[%s2058_s1] ss:$5 sm:$0x7] %vm424_vm7, %v423_v51   ;;  %vm639_vm7 = vcmask 376096  }
  0xc9   :  { %v444_v53 = vpop.permute.xlu0 %443  }
  0xca   :  { %984 = vst.msk [vmem:[%s2058_s1 + $0x3] ss:$5 sm:$0x3] %vm445_vm8, %v444_v53   ;;  %vm705_vm8 = vcmask 294096  }
  0xcb   :  { %v455_v54 = vpop.permute.xlu1 %454   ;;  %1000 = vst.msk [vmem:[%s2058_s1 + $0x3] ss:$5 sm:$0x3] %vm507_vm9, %v506_v49   ;;  %v587_v55 = vpop.permute.xlu2 %586   ;;  %vm654_vm9 = vcmask 359696  }
  0xcc   :  { %987 = vst.msk [vmem:[%s2058_s1 + $0x2] ss:$5 sm:$0x3] %vm456_vm10, %v455_v54   ;;  %vm684_vm10 = vcmask 326896  }
  0xd1   :  { %v485_v56 = vpop.permute.xlu0 %484  }
  0xd2   :  { %487 = vst.msk [vmem:[%s2058_s1] ss:$5 sm:$0x7] %vm486_vm11, %v485_v56   ;;  %vm750_vm11 = vcmask 244896  }
  0xd3   :  { %v495_v57 = vpop.permute.xlu1 %494   ;;  %553 = vst.msk [vmem:[%s2058_s1] ss:$5 sm:$0x7] %vm552_vm12, %v551_v52   ;;  %v627_v58 = vpop.permute.xlu2 %626   ;;  %vm694_vm12 = vcmask 310496  }
  0xd4   :  { %997 = vst.msk [vmem:[%s2058_s1 + $0x4] ss:$5 sm:$0x3] %vm496_vm13, %v495_v57   ;;  %vm720_vm13 = vcmask 277696  }
  0xd9   :  { %v521_v59 = vpop.permute.xlu0 %520  }
  0xda   :  { %1004 = vst.msk [vmem:[%s2058_s1 + $0x2] ss:$5 sm:$0x7] %vm522_vm0, %v521_v59   ;;  %vm786_vm0 = vcmask 195696  }
  0xdb   :  { %v536_v60 = vpop.permute.xlu1 %535   ;;  %1021 = vst.msk [vmem:[%s2058_s1 + $0x2] ss:$5 sm:$0x7] %vm588_vm2, %v587_v55   ;;  %v668_v61 = vpop.permute.xlu2 %667   ;;  %vm735_vm2 = vcmask 261296  }
  0xdc   :  { %1008 = vst.msk [vmem:[%s2058_s1 + $0x1] ss:$5 sm:$0x7] %vm537_vm14, %v536_v60   ;;  %vm760_vm14 = vcmask 228496  }
  0xe1   :  { %v561_v62 = vpop.permute.xlu0 %560  }
  0xe2   :  { %1014 = vst.msk [vmem:[%s2058_s1 + $0x4] ss:$5 sm:$0x3] %vm562_vm15, %v561_v62   ;;  %vm826_vm15 = vcmask 146496  }
  0xe3   :  { %v572_v63 = vpop.permute.xlu1 %571   ;;  %1031 = vst.msk [vmem:[%s2058_s1 + $0x4] ss:$5 sm:$0x3] %vm628_vm1, %v627_v58   ;;  %v704_v0 = vpop.permute.xlu2 %703   ;;  %vm771_vm1 = vcmask 212096  }
  0xe4   :  { %1017 = vst.msk [vmem:[%s2058_s1 + $0x3] ss:$5 sm:$0x3] %vm573_vm3, %v572_v63   ;;  %vm801_vm3 = vcmask 179296  }
  0xe9   :  { %v602_v1 = vpop.permute.xlu0 %601  }
  0xea   :  { %1025 = vst.msk [vmem:[%s2058_s1 + $0x1] ss:$5 sm:$0x7] %vm603_vm4, %v602_v1   ;;  %vm867_vm4 = vcmask 97296  }
  0xeb   :  { %v617_v2 = vpop.permute.xlu1 %616   ;;  %1042 = vst.msk [vmem:[%s2058_s1 + $0x1] ss:$5 sm:$0x7] %vm669_vm5, %v668_v61   ;;  %v749_v3 = vpop.permute.xlu2 %748   ;;  %vm816_vm5 = vcmask 162896  }
  0xec   :  { %619 = vst.msk [vmem:[%s2058_s1] ss:$5 sm:$0x7] %vm618_vm6, %v617_v2   ;;  %vm837_vm6 = vcmask 130096  }
  0xf1   :  { %v638_v4 = vpop.permute.xlu0 %637  }
  0xf2   :  { %1034 = vst.msk [vmem:[%s2058_s1 + $0x3] ss:$5 sm:$0x3] %vm639_vm7, %v638_v4   ;;  %vm852_vm7 = vcmask 113696  }
  0xf3   :  { %v653_v5 = vpop.permute.xlu1 %652   ;;  %1051 = vst.msk [vmem:[%s2058_s1 + $0x3] ss:$5 sm:$0x3] %vm705_vm8, %v704_v0   ;;  %v785_v6 = vpop.permute.xlu2 %784  }
  0xf4   :  { %1038 = vst.msk [vmem:[%s2058_s1 + $0x2] ss:$5 sm:$0x7] %vm654_vm9, %v653_v5  }
  0xf9   :  { %v683_v7 = vpop.permute.xlu0 %682  }
  0xfa   :  { %685 = vst.msk [vmem:[%s2058_s1] ss:$5 sm:$0x7] %vm684_vm10, %v683_v7  }
  0xfb   :  { %v693_v8 = vpop.permute.xlu1 %692   ;;  %751 = vst.msk [vmem:[%s2058_s1] ss:$5 sm:$0x7] %vm750_vm11, %v749_v3   ;;  %v825_v9 = vpop.permute.xlu2 %824  }
  0xfc   :  { %1048 = vst.msk [vmem:[%s2058_s1 + $0x4] ss:$5 sm:$0x3] %vm694_vm12, %v693_v8  }
 0x101   :  { %v719_v10 = vpop.permute.xlu0 %718  }
 0x102   :  { %1055 = vst.msk [vmem:[%s2058_s1 + $0x2] ss:$5 sm:$0x7] %vm720_vm13, %v719_v10  }
 0x103   :  { %v734_v11 = vpop.permute.xlu1 %733   ;;  %1072 = vst.msk [vmem:[%s2058_s1 + $0x2] ss:$5 sm:$0x7] %vm786_vm0, %v785_v6   ;;  %v866_v12 = vpop.permute.xlu2 %865  }
 0x104   :  { %1059 = vst.msk [vmem:[%s2058_s1 + $0x1] ss:$5 sm:$0x7] %vm735_vm2, %v734_v11  }
 0x109   :  { %v759_v13 = vpop.permute.xlu0 %758  }
 0x10a   :  { %1065 = vst.msk [vmem:[%s2058_s1 + $0x4] ss:$5 sm:$0x3] %vm760_vm14, %v759_v13  }
 0x10b   :  { %v770_v14 = vpop.permute.xlu1 %769   ;;  %1082 = vst.msk [vmem:[%s2058_s1 + $0x4] ss:$5 sm:$0x3] %vm826_vm15, %v825_v9  }
 0x10c   :  { %1068 = vst.msk [vmem:[%s2058_s1 + $0x3] ss:$5 sm:$0x3] %vm771_vm1, %v770_v14  }
 0x111   :  { %v800_v15 = vpop.permute.xlu0 %799  }
 0x112   :  { %1076 = vst.msk [vmem:[%s2058_s1 + $0x1] ss:$5 sm:$0x7] %vm801_vm3, %v800_v15  }
 0x113   :  { %v815_v16 = vpop.permute.xlu1 %814   ;;  %1093 = vst.msk [vmem:[%s2058_s1 + $0x1] ss:$5 sm:$0x7] %vm867_vm4, %v866_v12  }
 0x114   :  { %817 = vst.msk [vmem:[%s2058_s1] ss:$5 sm:$0x7] %vm816_vm5, %v815_v16  }
 0x119   :  { %v836_v17 = vpop.permute.xlu0 %835  }
 0x11a   :  { %1085 = vst.msk [vmem:[%s2058_s1 + $0x3] ss:$5 sm:$0x3] %vm837_vm6, %v836_v17  }
 0x11b   :  { %v851_v18 = vpop.permute.xlu1 %850  }
 0x11c   :  { %1089 = vst.msk [vmem:[%s2058_s1 + $0x2] ss:$5 sm:$0x7] %vm852_vm7, %v851_v18  }

// kernel: model_forward.1
= control target key start
LH: loop header
LB: loop body
LE: loop exit
PB: predicated region body
PF: predicated region fallthrough
CT: control target
= control target key end

     0   :  { %s1593_s13 = smov 1   ;;  %s1594_s16 = smov 127   ;;  %vm94_vm0 = vcmask 7168   ;;  %vm170_vm1 = vcmask 1039360   ;;  %vm266_vm2 = vcmask 1042432   ;;  %vm280_vm3 = vcmask 1045504   ;;  %s2325_s0 = inlined_call_operand.vmem [shape: f32[3,1664], index: 0, kind: input, shape index: {}]   ;;  %s2326_s2 = inlined_call_operand.vmem [shape: f32[8,1], index: 2, kind: input, shape index: {}]   ;;  %s2327_s1 = inlined_call_operand.vmem [shape: f32[8,9], index: 1, kind: input, shape index: {}]   ;;  %s2328_s3 = inlined_call_operand.vmem [shape: f32[1,1664], index: 3, kind: input, shape index: {}]   ;;  %s2329_s4 = inlined_call_operand.vmem [shape: f32[4,56], index: 4, kind: input, shape index: {}]   ;;  %s2330_s5 = inlined_call_operand.vmem [shape: f32[4,1], index: 5, kind: input, shape index: {}]   ;;  %s2331_s6 = inlined_call_operand.vmem [shape: f32[1,1664], index: 6, kind: input, shape index: {}]   ;;  %s2332_s7 = inlined_call_operand.vmem [shape: f32[4,1664], index: 7, kind: output, shape index: {}]  }
   0x1   :  { %v1645_v0 = vld [vmem:[%s2325_s0 + $0x10] sm:$0x77]  ;;  %v27_v2 = vld [vmem:[%s2325_s0 + $0x8] sm:$0x77]  ;;  %v29_v3 = vld [vmem:[%s2325_s0 + $0x18] sm:$0x77] }
   0x2   :  { %v1650_v1 = vld [vmem:[%s2325_s0 + $0x30] sm:$0x7]  ;;  %49 = vst [vmem:[#allocation1 + $0x20] ss:$2 sm:$0xff] %v1645_v0  ;;  %v1663_v4 = vld [vmem:[%s2325_s0] sm:$0x77] }
   0x3   :  { %34 = vst [vmem:[#allocation1] ss:$2 sm:$0xff] %v1650_v1  ;;  %v1668_v6 = vld [vmem:[%s2325_s0 + $0x28] sm:$0x77]  ;;  %v1678_v15 = vld [vmem:[%s2325_s0 + $0x20] sm:$0x77] }
   0x4   :  { %47 = vst [vmem:[#allocation1 + $0x10] ss:$2 sm:$0xff] %v27_v2  ;;  %vm305_vm4 = vcmask 1040384   ;;  %vm301_vm5 = vcmask 72704   ;;  %s1596_s20 = smov 88   ;;  %s1597_s21 = smov 78  }
   0x5   :  { %51 = vst [vmem:[#allocation1 + $0x30] ss:$2 sm:$0xff] %v29_v3  ;;  %s1598_s22 = smov 68   ;;  %s1599_s23 = smov 98   ;;  %vm944_vm6 = vcmask 556032   ;;  %vm890_vm7 = vcmask 637952  }
   0x6   :  { %s1600_s24 = smov 108   ;;  %s1601_s25 = smov 118   ;;  %vm836_vm8 = vcmask 719872   ;;  %vm782_vm9 = vcmask 801792   ;;  %vm728_vm10 = vcmask 883712   ;;  %vm674_vm11 = vcmask 965632  }
   0x7   :  { %vm979_vm12 = vcmask 457728   ;;  %vm1304_vm13 = vcmask 1043456  }
   0x9   :  { %v57_v7 = vld.sshfl [vmem:[#allocation1 + $0x28] sm:$0xff pattern:$0x75316420]  ;;  %v56_v9 = vld.sshfl [vmem:[#allocation1 + $0x20] sm:$0xff pattern:$0x75316420] }
   0xa   :  { %v35_v5 = vld.sshfl [vmem:[#allocation1] sm:$0xff pattern:$0x75316420]  ;;  %62 = vst [vmem:[#allocation1 + $0x20] ss:$2 sm:$0xff] %v1650_v1 }
   0xb   :  { %45 = vst [vmem:[#allocation1] ss:$2 sm:$0xff] %v1663_v4  ;;  %v1381_v8 = vpack.i.bf16 %v57_v7, %v35_v5  ;;  %v54_v10 = vld.sshfl [vmem:[#allocation1 + $0x10] sm:$0xff pattern:$0x75316420] }
   0xc   :  { %v55_v11 = vld.sshfl [vmem:[#allocation1 + $0x18] sm:$0xff pattern:$0x75316420]  ;;  %v58_v13 = vld.sshfl [vmem:[#allocation1 + $0x30] sm:$0xff pattern:$0x75316420] }
   0xd   :  { %1382 = vrot.lane.b32.xlu1 %v1381_v8, %s1593_s13  ;;  %v1376_v12 = vpack.i.bf16 %v55_v11, %v54_v10  ;;  %61 = vst [vmem:[#allocation1 + $0x10] ss:$2 sm:$0xff] %v1668_v6  ;;  %v59_v14 = vld.sshfl [vmem:[#allocation1 + $0x38] sm:$0xff pattern:$0x75316420] }
   0xe   :  { %127 = vst [vmem:[#allocation1 + $0x30] ss:$2 sm:$0xff] %v29_v3  ;;  %v1386_v16 = vpack.i.bf16 %v59_v14, %v58_v13 }
   0xf   :  { %1377 = vrot.lane.b32.xlu2 %v1376_v12, %s1593_s13 }
  0x11   :  { %v67_v19 = vld.sshfl [vmem:[#allocation1 + $0x20] sm:$0xff pattern:$0x75316420] }
  0x12   :  { %v52_v17 = vld.sshfl [vmem:[#allocation1] sm:$0xff pattern:$0x75316420]  ;;  %v53_v18 = vld.sshfl [vmem:[#allocation1 + $0x8] sm:$0xff pattern:$0x75316420] }
  0x13   :  { %60 = vst [vmem:[#allocation1] ss:$2 sm:$0xff] %v1678_v15  ;;  %v1391_v24 = vpack.i.bf16 %v53_v18, %v52_v17 }
  0x14   :  { %125 = vst [vmem:[#allocation1 + $0x20] ss:$2 sm:$0xff] %v1645_v0  ;;  %v65_v20 = vld.sshfl [vmem:[#allocation1 + $0x10] sm:$0xff pattern:$0x75316420] }
  0x15   :  { %v66_v21 = vld.sshfl [vmem:[#allocation1 + $0x18] sm:$0xff pattern:$0x75316420]  ;;  %1387 = vrot.lane.b32.xlu1 %v1386_v16, %s1593_s13  ;;  %v134_v23 = vld.sshfl [vmem:[#allocation1 + $0x30] sm:$0xff pattern:$0x75316420] }
  0x16   :  { %123 = vst [vmem:[#allocation1 + $0x10] ss:$2 sm:$0xff] %v27_v2  ;;  %v135_v22 = vld.sshfl [vmem:[#allocation1 + $0x38] sm:$0xff pattern:$0x75316420]  ;;  %v1401_v39 = vpack.i.bf16 %v66_v21, %v65_v20  ;;  %v1595_v20 = vmov 0  }
  0x17   :  { %158 = vrot.lane.b32.xlu0 %v135_v22, %s1594_s16  ;;  %196 = vst [vmem:[#allocation1 + $0x30] ss:$2 sm:$0xff] %v29_v3  ;;  %156 = vrot.lane.b32.xlu2 %v134_v23, %s1594_s16  ;;  %v295_v21 = vld [vmem:[%s2326_s2] sm:$0xff] }
  0x18   :  { %1411 = vset.pattern.permute.xlu0 %v1595_v20  ;;  %1592 = vset.pattern.permute.xlu2 %v1595_v20 }
  0x1a   :  { %v63_v25 = vld.sshfl [vmem:[#allocation1] sm:$0xff pattern:$0x75316420]  ;;  %v64_v26 = vld.sshfl [vmem:[#allocation1 + $0x8] sm:$0xff pattern:$0x75316420] }
  0x1b   :  { %121 = vst [vmem:[#allocation1] ss:$2 sm:$0xff] %v1663_v4  ;;  %v132_v27 = vld.sshfl [vmem:[#allocation1 + $0x20] sm:$0xff pattern:$0x75316420]  ;;  %v1396_v36 = vpack.i.bf16 %v64_v26, %v56_v9  ;;  %v1406_v41 = vpack.i.bf16 %v67_v19, %v63_v25 }
  0x1c   :  { %v133_v28 = vld.sshfl [vmem:[#allocation1 + $0x28] sm:$0xff pattern:$0x75316420]  ;;  %v1773_v26 = vld [vmem:[%s2327_s1] sm:$0xff] }
  0x1d   :  { %138 = vst [vmem:[#allocation1 + $0x20] ss:$2 sm:$0xff] %v1650_v1  ;;  %v130_v29 = vld.sshfl [vmem:[#allocation1 + $0x10] sm:$0xff pattern:$0x75316420]  ;;  %1392 = vrot.lane.b32.xlu1 %v1391_v24, %s1593_s13 }
  0x1e   :  { %v131_v30 = vld.sshfl [vmem:[#allocation1 + $0x18] sm:$0xff pattern:$0x75316420]  ;;  %v203_v19 = vld.sshfl [vmem:[#allocation1 + $0x30] sm:$0xff pattern:$0x75316420] }
  0x1f   :  { %137 = vst [vmem:[#allocation1 + $0x10] ss:$2 sm:$0xff] %v1668_v6  ;;  %148 = vrot.lane.b32.xlu0 %v130_v29, %s1594_s16  ;;  %152 = vrot.lane.b32.xlu2 %v132_v27, %s1594_s16 }
  0x22   :  { %v129_v31 = vld.sshfl [vmem:[#allocation1 + $0x8] sm:$0xff pattern:$0x75316420]  ;;  %v128_v32 = vld.sshfl [vmem:[#allocation1] sm:$0xff pattern:$0x75316420] }
  0x23   :  { %136 = vst [vmem:[#allocation1] ss:$2 sm:$0xff] %v1678_v15 }
  0x24   :  { %v143_v35 = vld.sshfl [vmem:[#allocation1 + $0x20] sm:$0xff pattern:$0x75316420] }
  0x25   :  { %150 = vrot.lane.b32.xlu1 %v131_v30, %s1594_s16  ;;  %194 = vst [vmem:[#allocation1 + $0x20] ss:$2 sm:$0xff] %v1645_v0  ;;  %v219_v30 = vrot.slane %v203_v19, 5 }
  0x26   :  { %v141_v33 = vld.sshfl [vmem:[#allocation1 + $0x10] sm:$0xff pattern:$0x75316420]  ;;  %v142_v34 = vld.sshfl [vmem:[#allocation1 + $0x18] sm:$0xff pattern:$0x75316420] }
  0x27   :  { %192 = vst [vmem:[#allocation1 + $0x10] ss:$2 sm:$0xff] %v27_v2  ;;  %146 = vrot.lane.b32.xlu0 %v129_v31, %s1594_s16  ;;  %164 = vrot.lane.b32.xlu2 %v141_v33, %s1594_s16 }
  0x2a   :  { %v139_v37 = vld.sshfl [vmem:[#allocation1] sm:$0xff pattern:$0x75316420]  ;;  %v140_v38 = vld.sshfl [vmem:[#allocation1 + $0x8] sm:$0xff pattern:$0x75316420] }
  0x2b   :  { %184 = vst [vmem:[#allocation1] ss:$2 sm:$0xff] %v1663_v4 }
  0x2c   :  { %v1722_v50 = vld.sshfl [vmem:[#allocation1 + $0x28] sm:$0xff pattern:$0x75316420]  ;;  %v1724_v51 = vld.sshfl [vmem:[#allocation1 + $0x20] sm:$0xff pattern:$0x75316420] }
  0x2d   :  { %1397 = vrot.lane.b32.xlu1 %v1396_v36, %s1593_s13  ;;  %207 = vst [vmem:[#allocation1 + $0x20] ss:$2 sm:$0xff] %v1650_v1  ;;  %v204_v1 = vld.sshfl [vmem:[#allocation1 + $0x38] sm:$0xff pattern:$0x75316420]  ;;  %v218_v33 = vrot.slane %v1722_v50, 5 }
  0x2e   :  { %v200_v43 = vld.sshfl [vmem:[#allocation1 + $0x18] sm:$0xff pattern:$0x75316420]  ;;  %v1710_v44 = vld.sshfl [vmem:[#allocation1 + $0x10] sm:$0xff pattern:$0x75316420] }
  0x2f   :  { %154 = vrot.lane.b32.xlu0 %v133_v28, %s1594_s16  ;;  %160 = vrot.lane.b32.xlu2 %v139_v37, %s1594_s16  ;;  %206 = vst [vmem:[#allocation1 + $0x10] ss:$2 sm:$0xff] %v1668_v6  ;;  %v216_v60 = vrot.slane %v200_v43, 5  ;;  %v220_v8 = vrot.slane %v204_v1, 5  ;;  %v215_v23 = vrot.slane %v1710_v44, 5 }
  0x32   :  { %v185_v40 = vld.sshfl [vmem:[#allocation1] sm:$0xff pattern:$0x75316420] }
  0x33   :  { %190 = vst [vmem:[#allocation1] ss:$2 sm:$0xff] %v1663_v4 }
  0x35   :  { %1402 = vrot.lane.b32.xlu1 %v1401_v39, %s1593_s13 }
  0x36   :  { %v210_v1 = vld.sshfl [vmem:[#allocation1 + $0x10] sm:$0xff pattern:$0x75316420] }
  0x37   :  { %144 = vrot.lane.b32.xlu0 %v128_v32, %s1594_s16  ;;  %168 = vrot.lane.b32.xlu2 %v143_v35, %s1594_s16 }
  0x3a   :  { %v198_v46 = vld.sshfl [vmem:[#allocation1 + $0x8] sm:$0xff pattern:$0x75316420]  ;;  %v1715_v47 = vld.sshfl [vmem:[#allocation1] sm:$0xff pattern:$0x75316420] }
  0x3b   :  { %205 = vst [vmem:[#allocation1] ss:$2 sm:$0xff] %v1678_v15  ;;  %v214_v3 = vrot.slane %v198_v46, 5 }
  0x3d   :  { %1407 = vrot.lane.b32.xlu1 %v1406_v41, %s1593_s13 }
  0x3f   :  { %166 = vrot.lane.b32.xlu0 %v142_v34, %s1594_s16  ;;  %186 = vrot.lane.b32.xlu2 %v185_v40, %s1594_s16 }
  0x42   :  { %v209_v20 = vld.sshfl [vmem:[#allocation1 + $0x8] sm:$0xff pattern:$0x75316420] }
  0x47   :  { %162 = vrot.lane.b32.xlu0 %v140_v38, %s1594_s16 }
  0x4f   :  { %298 = vperm.xlu0 %1411, %v295_v21  }
  0x69   :  { %v1708_v42 = vpop.permute.xlu2 %1377 }
  0x6a   :  { %v1380_v56 = vunpack.i.h.bf16 %v1708_v42  ;;  %v1379_v57 = vunpack.i.l.bf16 %v1708_v42 }
  0x6c   :  { %v97_v59 = vsel %vm94_vm0, %v1379_v57, %v1380_v56 }
  0x6d   :  { %v270_v7 = vsel %vm266_vm2, %v97_v59, %v216_v60 }
  0x71   :  { %v1713_v45 = vpop.permute.xlu2 %156 }
  0x79   :  { %v1720_v49 = vpop.permute.xlu2 %152 }
  0x7f   :  { %v1718_v48 = vpop.permute.xlu1 %1382 }
  0x80   :  { %v1385_v16 = vunpack.i.h.bf16 %v1718_v48 }
  0x81   :  { %v1729_v54 = vpop.permute.xlu2 %164 }
  0x87   :  { %v1727_v52 = vpop.permute.xlu1 %1387 }
  0x88   :  { %v1390_v61 = vunpack.i.h.bf16 %v1727_v52  ;;  %v1389_v62 = vunpack.i.l.bf16 %v1727_v52 }
  0x89   :  { %v159_v53 = vpop.permute.xlu0 %158  ;;  %v1742_v2 = vpop.permute.xlu2 %160 }
  0x8a   :  { %v178_v9 = vsel %vm170_vm1, %v159_v53, %v1742_v2  ;;  %v101_v12 = vsel %vm94_vm0, %v1389_v62, %v1390_v61  ;;  %v177_v28 = vsel %vm170_vm1, %v1713_v45, %v159_v53  ;;  %v100_v32 = vsel %vm94_vm0, %v1385_v16, %v1389_v62 }
  0x8b   :  { %v247_v22 = vrot.slane %v178_v9, 2  ;;  %v274_v27 = vsel %vm266_vm2, %v101_v12, %v220_v8  ;;  %v246_v36 = vrot.slane %v177_v28, 2  ;;  %v273_v41 = vsel %vm266_vm2, %v100_v32, %v219_v30 }
  0x8c   :  { %v223_v9 = vrot.slane %v210_v1, 5 }
  0x8d   :  { %v288_v35 = vsel %vm280_vm3, %v274_v27, %v247_v22  ;;  %v287_v50 = vsel %vm280_vm3, %v273_v41, %v246_v36  ;;  %v222_v27 = vrot.slane %v209_v20, 5 }
  0x8f   :  { %v1731_v55 = vpop.permute.xlu1 %1392 }
  0x90   :  { %v1395_v63 = vunpack.i.h.bf16 %v1731_v55  ;;  %v1394_v0 = vunpack.i.l.bf16 %v1731_v55  ;;  %v211_v55 = vld.sshfl [vmem:[#allocation1 + $0x18] sm:$0xff pattern:$0x75316420] }
  0x91   :  { %v149_v58 = vpop.permute.xlu0 %148 }
  0x92   :  { %v95_v5 = vsel %vm94_vm0, %v1394_v0, %v1395_v63  ;;  %v96_v29 = vsel %vm94_vm0, %v1395_v63, %v1379_v57  ;;  %v217_v63 = vrot.slane %v1724_v51, 5 }
  0x93   :  { %v268_v15 = vsel %vm266_vm2, %v95_v5, %v214_v3  ;;  %v269_v38 = vsel %vm266_vm2, %v96_v29, %v215_v23  ;;  %v212_v29 = vld.sshfl [vmem:[#allocation1 + $0x20] sm:$0xff pattern:$0x75316420] }
  0x97   :  { %v151_v4 = vpop.permute.xlu1 %150 }
  0x98   :  { %v174_v6 = vsel %vm170_vm1, %v151_v4, %v1720_v49  ;;  %v173_v13 = vsel %vm170_vm1, %v149_v58, %v151_v4 }
  0x99   :  { %v1752_v10 = vpop.permute.xlu0 %146  ;;  %v243_v11 = vrot.slane %v174_v6, 2  ;;  %v242_v24 = vrot.slane %v173_v13, 2 }
  0x9a   :  { %v172_v14 = vsel %vm170_vm1, %v1752_v10, %v149_v58  ;;  %v213_v58 = vrot.slane %v1715_v47, 5 }
  0x9b   :  { %v241_v17 = vrot.slane %v172_v14, 2  ;;  %1334 = vmatpush.msk.msra.mxu3 %vm305_vm4, %v243_v11  ;;  %v284_v18 = vsel %vm280_vm3, %v270_v7, %v243_v11  ;;  %v283_v39 = vsel %vm280_vm3, %v269_v38, %v242_v24  ;;  %v169_v7 = vpop.permute.xlu2 %168 }
  0x9d   :  { %1330 = vmatpush.msk.msra.mxu2 %vm305_vm4, %v241_v17  ;;  %v282_v25 = vsel %vm280_vm3, %v268_v15, %v241_v17  ;;  %407 = vmatpush.msra.mxu3 %v284_v18 }
  0x9e   :  { %1335 = vmatmul.msk.f32.vlgmr.msra.gmra.mxu3 %vm301_vm5, %v1773_v26 }
  0x9f   :  { %367 = vmatpush.msra.mxu2 %v282_v25  ;;  %1342 = vmatpush.msk.msrb.mxu3 %vm305_vm4, %v247_v22  ;;  %v1782_v31 = vpop.permute.xlu1 %1397 }
  0xa0   :  { %1331 = vmatmul.msk.f32.vlgmr.msra.gmra.mxu2 %vm301_vm5, %v1773_v26  ;;  %v1399_v34 = vunpack.i.l.bf16 %v1782_v31  ;;  %v1400_v62 = vunpack.i.h.bf16 %v1782_v31 }
  0xa1   :  { %1332 = vmatpush.msk.msrb.mxu2 %vm305_vm4, %v242_v24  ;;  %v155_v37 = vpop.permute.xlu0 %154  ;;  %487 = vmatpush.msrb.mxu3 %v288_v35  ;;  %v208_v24 = vld.sshfl [vmem:[#allocation1] sm:$0xff pattern:$0x75316420]  ;;  %v225_v35 = vrot.slane %v212_v29, 5 }
  0xa2   :  { %v176_v40 = vsel %vm170_vm1, %v155_v37, %v1713_v45  ;;  %v99_v43 = vsel %vm94_vm0, %v1399_v34, %v1385_v16  ;;  %v1384_v45 = vunpack.i.l.bf16 %v1718_v48  ;;  %v98_v5 = vsel %vm94_vm0, %v1380_v56, %v1399_v34 }
  0xa3   :  { %387 = vmatpush.msrb.mxu2 %v283_v39  ;;  %v245_v44 = vrot.slane %v176_v40, 2  ;;  %v272_v46 = vsel %vm266_vm2, %v99_v43, %v218_v33  ;;  %v271_v8 = vsel %vm266_vm2, %v98_v5, %v217_v63  ;;  %v187_v28 = vpop.permute.xlu2 %186  ;;  %v221_v31 = vrot.slane %v208_v24, 5 }
  0xa4   :  { %v120_v60 = vsel %vm94_vm0, %v1384_v45, %v1394_v0  ;;  %v175_v0 = vsel %vm170_vm1, %v1720_v49, %v155_v37  ;;  %v189_v34 = vsel %vm170_vm1, %v169_v7, %v187_v28 }
  0xa5   :  { %1340 = vmatpush.msk.msra.mxu2 %vm305_vm4, %v246_v36  ;;  %1338 = vmatpush.msk.msra.mxu1 %vm305_vm4, %v245_v44  ;;  %v286_v53 = vsel %vm280_vm3, %v272_v46, %v245_v44  ;;  %v267_v6 = vsel %vm266_vm2, %v120_v60, %v213_v58  ;;  %v244_v11 = vrot.slane %v175_v0, 2  ;;  %v252_v52 = vrot.slane %v189_v34, 2 }
  0xa6   :  { %1343 = vmatmul.msk.f32.vlgmr.msrb.gmra.mxu3 %vm301_vm5, %v1773_v26 }
  0xa7   :  { %467 = vmatpush.msra.mxu2 %v287_v50  ;;  %447 = vmatpush.msra.mxu1 %v286_v53  ;;  %v1807_v57 = vpop.permute.xlu1 %1402  ;;  %v285_v12 = vsel %vm280_vm3, %v271_v8, %v244_v11  ;;  %v1883_v50 = vld [vmem:[%s2328_s3] sm:$0xff] }
  0xa8   :  { %1333 = vmatmul.msk.f32.vlgmr.msrb.gmra.mxu2 %vm301_vm5, %v1773_v26  ;;  %1339 = vmatmul.msk.f32.vlgmr.msra.gmra.mxu1 %vm301_vm5, %v1773_v26  ;;  %v1405_v3 = vunpack.i.h.bf16 %v1807_v57  ;;  %v1404_v47 = vunpack.i.l.bf16 %v1807_v57  ;;  %v599_v57 = vperm.slane %v1883_v50, 3  ;;  %v596_v58 = vperm.slane %v1883_v50, 0 }
  0xa9   :  { %v145_v59 = vpop.permute.xlu0 %144  ;;  %v600_v1 = vperm.slane %v1883_v50, 4  ;;  %v602_v28 = vperm.slane %v1883_v50, 6 }
  0xaa   :  { %v171_v48 = vsel %vm170_vm1, %v145_v59, %v1752_v10  ;;  %v224_v10 = vrot.slane %v211_v55, 5  ;;  %v104_v42 = vsel %vm94_vm0, %v1400_v62, %v1404_v47  ;;  %v105_v56 = vsel %vm94_vm0, %v1404_v47, %v1405_v3 }
  0xab   :  { %v240_v4 = vrot.slane %v171_v48, 2  ;;  %v277_v16 = vsel %vm266_vm2, %v104_v42, %v223_v9  ;;  %v601_v47 = vperm.slane %v1883_v50, 5 }
  0xac   :  { %v278_v17 = vsel %vm266_vm2, %v105_v56, %v224_v10  ;;  %v598_v56 = vperm.slane %v1883_v50, 2 }
  0xad   :  { %1328 = vmatpush.msk.msra.mxu0 %vm305_vm4, %v240_v4  ;;  %v281_v51 = vsel %vm280_vm3, %v267_v6, %v240_v4 }
  0xaf   :  { %347 = vmatpush.msra.mxu0 %v281_v51  ;;  %v1408_v15 = vpop.permute.xlu1 %1407  ;;  %v597_v51 = vperm.slane %v1883_v50, 1 }
  0xb0   :  { %1329 = vmatmul.msk.f32.vlgmr.msra.gmra.mxu0 %vm301_vm5, %v1773_v26  ;;  %1341 = vmatmul.msk.f32.vlgmr.msra.gmra.mxu2 %vm301_vm5, %v1773_v26  ;;  %v1409_v21 = vunpack.i.l.bf16 %v1408_v15  ;;  %v1410_v25 = vunpack.i.h.bf16 %v1408_v15  ;;  %v593_v15 = vld [vmem:[%s2328_s3 + $0x8] sm:$0x1f] }
  0xb1   :  { %1336 = vmatpush.msk.msrb.mxu0 %vm305_vm4, %v244_v11  ;;  %v167_v49 = vpop.permute.xlu0 %166  ;;  %v605_v20 = vperm.slane %v593_v15, 1 }
  0xb2   :  { %v181_v13 = vsel %vm170_vm1, %v1729_v54, %v167_v49  ;;  %v182_v14 = vsel %vm170_vm1, %v167_v49, %v169_v7  ;;  %v103_v30 = vsel %vm94_vm0, %v1409_v21, %v1400_v62  ;;  %v102_v33 = vsel %vm94_vm0, %v1390_v61, %v1409_v21 }
  0xb3   :  { %v250_v18 = vrot.slane %v181_v13, 2  ;;  %v251_v19 = vrot.slane %v182_v14, 2  ;;  %427 = vmatpush.msrb.mxu0 %v285_v12  ;;  %v276_v38 = vsel %vm266_vm2, %v103_v30, %v222_v27  ;;  %v106_v39 = vsel %vm94_vm0, %v1405_v3, %v1410_v25 }
  0xb4   :  { %v275_v43 = vsel %vm266_vm2, %v102_v33, %v221_v31  ;;  %v279_v44 = vsel %vm266_vm2, %v106_v39, %v225_v35  ;;  %v603_v30 = vperm.slane %v1883_v50, 7  ;;  %v606_v39 = vperm.slane %v593_v15, 2 }
  0xb5   :  { %1348 = vmatpush.msk.msrb.mxu2 %vm305_vm4, %v250_v18  ;;  %1350 = vmatpush.msk.msra.mxu3 %vm305_vm4, %v251_v19  ;;  %v291_v22 = vsel %vm280_vm3, %v277_v16, %v250_v18  ;;  %v292_v23 = vsel %vm280_vm3, %v278_v17, %v251_v19  ;;  %v604_v16 = vperm.slane %v593_v15, 0 }
  0xb7   :  { %547 = vmatpush.msrb.mxu2 %v291_v22  ;;  %567 = vmatpush.msra.mxu3 %v292_v23 }
  0xb8   :  { %1337 = vmatmul.msk.f32.vlgmr.msrb.gmra.mxu0 %vm301_vm5, %v1773_v26  ;;  %1349 = vmatmul.msk.f32.vlgmr.msrb.gmra.mxu2 %vm301_vm5, %v1773_v26 }
  0xb9   :  { %1351 = vmatmul.msk.f32.vlgmr.msra.gmra.mxu3 %vm301_vm5, %v1773_v26  ;;  %v163_v32 = vpop.permute.xlu0 %162 }
  0xba   :  { %v179_v36 = vsel %vm170_vm1, %v1742_v2, %v163_v32  ;;  %v180_v37 = vsel %vm170_vm1, %v163_v32, %v1729_v54  ;;  %v293_v54 = vsel %vm280_vm3, %v279_v44, %v252_v52 }
  0xbb   :  { %v248_v40 = vrot.slane %v179_v36, 2  ;;  %v249_v41 = vrot.slane %v180_v37, 2  ;;  %v608_v36 = vperm.slane %v593_v15, 4 }
  0xbd   :  { %1344 = vmatpush.msk.msra.mxu0 %vm305_vm4, %v248_v40  ;;  %1346 = vmatpush.msk.msrb.mxu1 %vm305_vm4, %v249_v41  ;;  %v289_v61 = vsel %vm280_vm3, %v275_v43, %v248_v40  ;;  %v290_v2 = vsel %vm280_vm3, %v276_v38, %v249_v41  ;;  %v607_v43 = vperm.slane %v593_v15, 3 }
  0xbf   :  { %507 = vmatpush.msra.mxu0 %v289_v61  ;;  %527 = vmatpush.msrb.mxu1 %v290_v2 }
  0xc0   :  { %1345 = vmatmul.msk.f32.vlgmr.msra.gmra.mxu0 %vm301_vm5, %v1773_v26  ;;  %1347 = vmatmul.msk.f32.vlgmr.msrb.gmra.mxu1 %vm301_vm5, %v1773_v26 }
  0xc1   :  { %1352 = vmatpush.msk.msrb.mxu0 %vm305_vm4, %v252_v52  ;;  %v1878_v46 = vpop.permute.xlu0 %298 }
  0xc3   :  { %587 = vmatpush.msrb.mxu0 %v293_v54 }
  0xc8   :  { %1353 = vmatmul.msk.f32.vlgmr.msrb.gmra.mxu0 %vm301_vm5, %v1773_v26 }
 0x121   :  { %v409_v53 = vpop.f32.mrf.mxu3 }
 0x122   :  { %v410_v45 = vadd.f32 %v409_v53, %v1878_v46 }
 0x123   :  { %v369_v55 = vpop.f32.mrf.mxu2 }
 0x124   :  { %v1889_v62 = vmul.f32 %v599_v57, %v410_v45  ;;  %v370_v8 = vadd.f32 %v369_v55, %v1878_v46 }
 0x125   :  { %v449_v48 = vpop.f32.mrf.mxu1 }
 0x126   :  { %v450_v3 = vadd.f32 %v449_v48, %v1878_v46  ;;  %v1913_v9 = vmul.f32 %v597_v51, %v370_v8 }
 0x128   :  { %v1904_v6 = vmul.f32 %v601_v47, %v450_v3 }
 0x129   :  { %v489_v25 = vpop.f32.mrf.mxu3 }
 0x12a   :  { %v490_v29 = vadd.f32 %v489_v25, %v1878_v46 }
 0x12b   :  { %v389_v10 = vpop.f32.mrf.mxu2 }
 0x12c   :  { %v390_v42 = vadd.f32 %v389_v10, %v1878_v46  ;;  %v1957_v32 = vmul.f32 %v603_v30, %v490_v29 }
 0x12d   :  { %v349_v59 = vpop.f32.mrf.mxu0 }
 0x12e   :  { %v350_v60 = vadd.f32 %v349_v59, %v1878_v46  ;;  %v1922_v49 = vmul.f32 %v598_v56, %v390_v42 }
 0x130   :  { %v1891_v26 = vmul.f32 %v596_v58, %v350_v60  ;;  %v1472_v12 = vpack.i.bf16 %v1889_v62, %v1922_v49  ;;  %v1477_v17 = vpack.i.bf16 %v1922_v49, %v1913_v9 }
 0x132   :  { %v1422_v63 = vpack.i.bf16 %v1889_v62, %v1891_v26  ;;  %v1437_v11 = vpack.i.bf16 %v1913_v9, %v1891_v26 }
 0x133   :  { %v469_v24 = vpop.f32.mrf.mxu2 }
 0x134   :  { %1423 = vrot.lane.b32.xlu1 %v1422_v63, %s1596_s20  ;;  %1418 = vrot.lane.b32.xlu2 %v1422_v63, %s1597_s21  ;;  %v470_v27 = vadd.f32 %v469_v24, %v1878_v46 }
 0x135   :  { %1413 = vrot.lane.b32.xlu0 %v1422_v63, %s1598_s22  ;;  %v429_v4 = vpop.f32.mrf.mxu0 }
 0x136   :  { %v430_v5 = vadd.f32 %v429_v4, %v1878_v46  ;;  %v1955_v31 = vmul.f32 %v602_v28, %v470_v27 }
 0x138   :  { %v1902_v0 = vmul.f32 %v600_v1, %v430_v5  ;;  %v1537_v33 = vpack.i.bf16 %v1957_v32, %v1955_v31 }
 0x13a   :  { %v1447_v7 = vpack.i.bf16 %v1904_v6, %v1902_v0 }
 0x13b   :  { %v549_v37 = vpop.f32.mrf.mxu2 }
 0x13c   :  { %1428 = vrot.lane.b32.xlu1 %v1422_v63, %s1599_s23  ;;  %1433 = vrot.lane.b32.xlu2 %v1422_v63, %s1600_s24  ;;  %v569_v38 = vpop.f32.mrf.mxu3  ;;  %v550_v40 = vadd.f32 %v549_v37, %v1878_v46  ;;  %v2072_v37 = vld [vmem:[%s2329_s4] sm:$0xf] }
 0x13d   :  { %1448 = vrot.lane.b32.xlu0 %v1447_v7, %s1598_s22  ;;  %v509_v13 = vpop.f32.mrf.mxu0  ;;  %v529_v14 = vpop.f32.mrf.mxu1  ;;  %v570_v41 = vadd.f32 %v569_v38, %v1878_v46 }
 0x13e   :  { %v510_v18 = vadd.f32 %v509_v13, %v1878_v46  ;;  %v530_v19 = vadd.f32 %v529_v14, %v1878_v46  ;;  %v1976_v61 = vmul.f32 %v606_v39, %v550_v40 }
 0x13f   :  { %v1978_v2 = vmul.f32 %v607_v43, %v570_v41 }
 0x140   :  { %v1939_v21 = vmul.f32 %v604_v16, %v510_v18  ;;  %v1941_v22 = vmul.f32 %v605_v20, %v530_v19 }
 0x141   :  { %v1567_v44 = vpack.i.bf16 %v1978_v2, %v1976_v61 }
 0x142   :  { %v1502_v23 = vpack.i.bf16 %v1941_v22, %v1939_v21 }
 0x144   :  { %1438 = vrot.lane.b32.xlu1 %v1437_v11, %s1601_s25  ;;  %1463 = vrot.lane.b32.xlu2 %v1447_v7, %s1599_s23 }
 0x145   :  { %1453 = vrot.lane.b32.xlu0 %v1447_v7, %s1597_s21  ;;  %v589_v34 = vpop.f32.mrf.mxu0 }
 0x146   :  { %v590_v35 = vadd.f32 %v589_v34, %v1878_v46 }
 0x148   :  { %v1970_v52 = vmul.f32 %v608_v36, %v590_v35 }
 0x14c   :  { %1443 = vrot.lane.b32.xlu1 %v1447_v7, %s1601_s25  ;;  %1473 = vrot.lane.b32.xlu2 %v1472_v12, %s1601_s25 }
 0x14d   :  { %1458 = vrot.lane.b32.xlu0 %v1447_v7, %s1596_s20 }
 0x154   :  { %1468 = vrot.lane.b32.xlu1 %v1447_v7, %s1600_s24  ;;  %1478 = vrot.lane.b32.xlu2 %v1477_v17, %s1598_s22 }
 0x155   :  { %1488 = vrot.lane.b32.xlu0 %v1477_v17, %s1596_s20 }
 0x15c   :  { %1483 = vrot.lane.b32.xlu1 %v1477_v17, %s1597_s21  ;;  %1493 = vrot.lane.b32.xlu2 %v1477_v17, %s1599_s23 }
 0x15d   :  { %1503 = vrot.lane.b32.xlu0 %v1502_v23, %s1601_s25 }
 0x164   :  { %1498 = vrot.lane.b32.xlu2 %v1477_v17, %s1600_s24  ;;  %1518 = vrot.lane.b32.xlu1 %v1502_v23, %s1596_s20 }
 0x165   :  { %1508 = vrot.lane.b32.xlu0 %v1502_v23, %s1598_s22 }
 0x16c   :  { %1538 = vrot.lane.b32.xlu1 %v1537_v33, %s1598_s22  ;;  %1513 = vrot.lane.b32.xlu2 %v1502_v23, %s1597_s21 }
 0x16d   :  { %1523 = vrot.lane.b32.xlu0 %v1502_v23, %s1599_s23 }
 0x174   :  { %1543 = vrot.lane.b32.xlu1 %v1537_v33, %s1597_s21  ;;  %1528 = vrot.lane.b32.xlu2 %v1502_v23, %s1600_s24 }
 0x175   :  { %1548 = vrot.lane.b32.xlu0 %v1537_v33, %s1596_s20 }
 0x17c   :  { %1558 = vrot.lane.b32.xlu1 %v1537_v33, %s1600_s24  ;;  %1533 = vrot.lane.b32.xlu2 %v1537_v33, %s1601_s25 }
 0x17d   :  { %888 = vrot.lane.b32.xlu0 %v1970_v52, %s1597_s21 }
 0x184   :  { %942 = vrot.lane.b32.xlu1 %v1970_v52, %s1598_s22  ;;  %1553 = vrot.lane.b32.xlu2 %v1537_v33, %s1599_s23 }
 0x185   :  { %1568 = vrot.lane.b32.xlu0 %v1567_v44, %s1598_s22 }
 0x18c   :  { %1563 = vrot.lane.b32.xlu1 %v1567_v44, %s1601_s25  ;;  %1573 = vrot.lane.b32.xlu2 %v1567_v44, %s1597_s21 }
 0x18d   :  { %1583 = vrot.lane.b32.xlu0 %v1567_v44, %s1599_s23 }
 0x18e   :  { %v1989_v54 = vpop.permute.xlu2 %1418 }
 0x18f   :  { %v1421_v11 = vunpack.i.h.bf16 %v1989_v54  ;;  %v1420_v35 = vunpack.i.l.bf16 %v1989_v54  ;;  %v973_v54 = vld [vmem:[%s2330_s5] sm:$0xf] }
 0x194   :  { %1578 = vrot.lane.b32.xlu1 %v1567_v44, %s1596_s20  ;;  %1588 = vrot.lane.b32.xlu2 %v1567_v44, %s1600_s24 }
 0x195   :  { %726 = vrot.lane.b32.xlu0 %v1970_v52, %s1600_s24 }
 0x196   :  { %v1995_v46 = vpop.permute.xlu2 %1433 }
 0x197   :  { %v1436_v24 = vunpack.i.h.bf16 %v1995_v46 }
 0x19c   :  { %834 = vrot.lane.b32.xlu1 %v1970_v52, %s1596_s20  ;;  %780 = vrot.lane.b32.xlu2 %v1970_v52, %s1599_s23 }
 0x19e   :  { %v2001_v50 = vpop.permute.xlu2 %1463 }
 0x19f   :  { %v1465_v18 = vunpack.i.l.bf16 %v2001_v50 }
 0x1a4   :  { %672 = vrot.lane.b32.xlu1 %v1970_v52, %s1601_s25  ;;  %976 = vperm.xlu2 %1592, %v973_v54  }
 0x1a6   :  { %v2005_v53 = vpop.permute.xlu1 %1423  ;;  %v2007_v45 = vpop.permute.xlu2 %1473 }
 0x1a7   :  { %v2009_v57 = vpop.permute.xlu0 %1413  ;;  %v1426_v15 = vunpack.i.h.bf16 %v2005_v53  ;;  %v1476_v30 = vunpack.i.h.bf16 %v2007_v45  ;;  %v1425_v44 = vunpack.i.l.bf16 %v2005_v53 }
 0x1a8   :  { %v1416_v60 = vunpack.i.h.bf16 %v2009_v57  ;;  %v1415_v48 = vunpack.i.l.bf16 %v2009_v57 }
 0x1ae   :  { %v2011_v58 = vpop.permute.xlu1 %1428  ;;  %v1479_v59 = vpop.permute.xlu2 %1478 }
 0x1af   :  { %v1481_v63 = vunpack.i.h.bf16 %v1479_v59  ;;  %v1480_v1 = vunpack.i.l.bf16 %v1479_v59  ;;  %v2015_v3 = vpop.permute.xlu0 %1448  ;;  %v1431_v16 = vunpack.i.h.bf16 %v2011_v58 }
 0x1b0   :  { %v1450_v47 = vunpack.i.l.bf16 %v2015_v3 }
 0x1b1   :  { %v945_v4 = vsel %vm944_vm6, %v1415_v48, %v1480_v1  ;;  %v946_v5 = vsel %vm944_vm6, %v1480_v1, %v1481_v63  ;;  %v947_v55 = vsel %vm944_vm6, %v1481_v63, %v1416_v60  ;;  %v786_v20 = vsel %vm782_vm9, %v1431_v16, %v1465_v18 }
 0x1b2   :  { %992 = vmatpush.msra.mxu1 %v945_v4  ;;  %1012 = vmatpush.msra.mxu2 %v946_v5  ;;  %v948_v51 = vsel %vm944_vm6, %v1416_v60, %v1450_v47  ;;  %v1430_v5 = vunpack.i.l.bf16 %v2011_v58 }
 0x1b3   :  { %1032 = vmatpush.msrb.mxu3 %v947_v55  ;;  %1052 = vmatpush.msra.mxu0 %v948_v51 }
 0x1b6   :  { %v2026_v7 = vpop.permute.xlu1 %1438  ;;  %v2028_v8 = vpop.permute.xlu2 %1493 }
 0x1b7   :  { %v2030_v10 = vpop.permute.xlu0 %1453  ;;  %v1496_v59 = vunpack.i.h.bf16 %v2028_v8 }
 0x1b8   :  { %v1455_v42 = vunpack.i.l.bf16 %v2030_v10 }
 0x1ba   :  { %v894_v56 = vsel %vm890_vm7, %v1421_v11, %v1455_v42 }
 0x1bb   :  { %1053 = vmatpush.msra.mxu0 %v894_v56 }
 0x1be   :  { %v2037_v12 = vpop.permute.xlu1 %1443  ;;  %v2039_v13 = vpop.permute.xlu2 %1498 }
 0x1bf   :  { %v2041_v14 = vpop.permute.xlu0 %1458  ;;  %v1445_v25 = vunpack.i.l.bf16 %v2037_v12  ;;  %v1501_v55 = vunpack.i.h.bf16 %v2039_v13  ;;  %v1500_v51 = vunpack.i.l.bf16 %v2039_v13 }
 0x1c0   :  { %v1460_v17 = vunpack.i.l.bf16 %v2041_v14 }
 0x1c1   :  { %v678_v34 = vsel %vm674_vm11, %v1476_v30, %v1445_v25 }
 0x1c2   :  { %v840_v19 = vsel %vm836_vm8, %v1426_v15, %v1460_v17 }
 0x1c3   :  { %1054 = vmatpush.msra.mxu0 %v840_v19  ;;  %v1435_v19 = vunpack.i.l.bf16 %v1995_v46 }
 0x1c5   :  { %1055 = vmatpush.msra.mxu0 %v786_v20  ;;  %v1441_v20 = vunpack.i.h.bf16 %v2026_v7 }
 0x1c6   :  { %v2053_v23 = vpop.permute.xlu1 %1468  ;;  %v2058_v29 = vpop.permute.xlu2 %1513 }
 0x1c7   :  { %v1470_v27 = vunpack.i.l.bf16 %v2053_v23  ;;  %v1489_v28 = vpop.permute.xlu0 %1488 }
 0x1c8   :  { %v1491_v38 = vunpack.i.h.bf16 %v1489_v28  ;;  %v1490_v39 = vunpack.i.l.bf16 %v1489_v28  ;;  %v1440_v28 = vunpack.i.l.bf16 %v2026_v7  ;;  %v1243_v7 = vld [vmem:[%s2331_s6] sm:$0xff] }
 0x1c9   :  { %v732_v33 = vsel %vm728_vm10, %v1436_v24, %v1470_v27  ;;  %v1251_v54 = vperm.slane %v1243_v7, 4 }
 0x1ca   :  { %1056 = vmatpush.msra.mxu0 %v732_v33  ;;  %v838_v56 = vsel %vm836_vm8, %v1490_v39, %v1491_v38 }
 0x1cc   :  { %1057 = vmatpush.msra.mxu0 %v678_v34  ;;  %v1475_v34 = vunpack.i.l.bf16 %v2007_v45  ;;  %v731_v45 = vsel %vm728_vm10, %v1501_v55, %v1436_v24 }
 0x1ce   :  { %v1484_v36 = vpop.permute.xlu1 %1483  ;;  %1058 = vmatpush.msra.mxu0 %v1889_v62  ;;  %v1495_v62 = vunpack.i.l.bf16 %v2028_v8  ;;  %v2081_v60 = vpop.permute.xlu2 %1528  ;;  %v837_v8 = vsel %vm836_vm8, %v1425_v44, %v1490_v39 }
 0x1cf   :  { %v1486_v40 = vunpack.i.h.bf16 %v1484_v36  ;;  %v1485_v41 = vunpack.i.l.bf16 %v1484_v36  ;;  %v2074_v43 = vpop.permute.xlu0 %1503  ;;  %1357 = vmatmul.msk.f32.vlgmr.msra.gmra.mxu0 %vm979_vm12, %v2072_v37  ;;  %v785_v36 = vsel %vm782_vm9, %v1496_v59, %v1431_v16  ;;  %v675_v16 = vsel %vm674_vm11, %v1440_v28, %v1441_v20 }
 0x1d0   :  { %v783_v13 = vsel %vm782_vm9, %v1430_v5, %v1495_v62  ;;  %v784_v33 = vsel %vm782_vm9, %v1495_v62, %v1496_v59  ;;  %v676_v59 = vsel %vm674_vm11, %v1441_v20, %v1475_v34  ;;  %v1456_v62 = vunpack.i.h.bf16 %v2030_v10 }
 0x1d1   :  { %v891_v63 = vsel %vm890_vm7, %v1420_v35, %v1485_v41  ;;  %v892_v1 = vsel %vm890_vm7, %v1485_v41, %v1486_v40  ;;  %v893_v4 = vsel %vm890_vm7, %v1486_v40, %v1421_v11  ;;  %v839_v11 = vsel %vm836_vm8, %v1491_v38, %v1426_v15 }
 0x1d2   :  { %993 = vmatpush.msra.mxu1 %v891_v63  ;;  %1013 = vmatpush.msra.mxu2 %v892_v1  ;;  %v729_v38 = vsel %vm728_vm10, %v1435_v19, %v1500_v51  ;;  %v730_v40 = vsel %vm728_vm10, %v1500_v51, %v1501_v55  ;;  %v1451_v41 = vunpack.i.h.bf16 %v2015_v3  ;;  %v677_v63 = vsel %vm674_vm11, %v1475_v34, %v1476_v30 }
 0x1d3   :  { %1033 = vmatpush.msrb.mxu3 %v893_v4  ;;  %v1461_v4 = vunpack.i.h.bf16 %v2041_v14  ;;  %v1466_v55 = vunpack.i.h.bf16 %v2001_v50  ;;  %v895_v30 = vsel %vm890_vm7, %v1455_v42, %v1456_v62 }
 0x1d4   :  { %994 = vmatpush.msra.mxu1 %v837_v8  ;;  %1014 = vmatpush.msra.mxu2 %v838_v56  ;;  %v949_v24 = vsel %vm944_vm6, %v1450_v47, %v1451_v41 }
 0x1d5   :  { %1034 = vmatpush.msrb.mxu3 %v839_v11  ;;  %v841_v10 = vsel %vm836_vm8, %v1460_v17, %v1461_v4  ;;  %v1446_v11 = vunpack.i.h.bf16 %v2037_v12  ;;  %v787_v20 = vsel %vm782_vm9, %v1465_v18, %v1466_v55  ;;  %v1515_v18 = vunpack.i.l.bf16 %v2058_v29 }
 0x1d6   :  { %995 = vmatpush.msra.mxu1 %v783_v13  ;;  %1015 = vmatpush.msra.mxu2 %v784_v33  ;;  %v2105_v39 = vpop.permute.xlu1 %1518  ;;  %v2121_v1 = vpop.permute.xlu2 %1533 }
 0x1d7   :  { %1035 = vmatpush.msrb.mxu3 %v785_v36  ;;  %v2107_v15 = vpop.permute.xlu0 %1508  ;;  %v679_v50 = vsel %vm674_vm11, %v1445_v25, %v1446_v11 }
 0x1d8   :  { %996 = vmatpush.msra.mxu1 %v729_v38  ;;  %1016 = vmatpush.msra.mxu2 %v730_v40  ;;  %v1511_v13 = vunpack.i.h.bf16 %v2107_v15  ;;  %v1516_v40 = vunpack.i.h.bf16 %v2058_v29 }
 0x1d9   :  { %1036 = vmatpush.msrb.mxu3 %v731_v45 }
 0x1da   :  { %997 = vmatpush.msra.mxu1 %v675_v16  ;;  %1017 = vmatpush.msra.mxu2 %v676_v59 }
 0x1db   :  { %1037 = vmatpush.msrb.mxu3 %v677_v63 }
 0x1dc   :  { %998 = vmatpush.msra.mxu1 %v1891_v26  ;;  %1018 = vmatpush.msra.mxu2 %v1913_v9  ;;  %v1510_v26 = vunpack.i.l.bf16 %v2107_v15 }
 0x1dd   :  { %1038 = vmatpush.msrb.mxu3 %v1922_v49  ;;  %1354 = vmatmul.msk.f32.vlgmr.msra.gmra.mxu1 %vm979_vm12, %v2072_v37  ;;  %v1471_v49 = vunpack.i.h.bf16 %v2053_v23 }
 0x1de   :  { %1072 = vmatpush.msrb.mxu1 %v949_v24  ;;  %v1539_v51 = vpop.permute.xlu1 %1538  ;;  %1355 = vmatmul.msk.f32.vlgmr.msra.gmra.mxu2 %vm979_vm12, %v2072_v37  ;;  %v1554_v17 = vpop.permute.xlu2 %1553  ;;  %v1521_v24 = vunpack.i.h.bf16 %v2105_v39 }
 0x1df   :  { %v1541_v9 = vunpack.i.h.bf16 %v1539_v51  ;;  %v1540_v3 = vunpack.i.l.bf16 %v1539_v51  ;;  %v2139_v47 = vpop.permute.xlu0 %1523  ;;  %1356 = vmatmul.msk.f32.vlgmr.msrb.gmra.mxu3 %vm979_vm12, %v2072_v37  ;;  %v733_v14 = vsel %vm728_vm10, %v1470_v27, %v1471_v49  ;;  %v1556_v27 = vunpack.i.h.bf16 %v1554_v17 }
 0x1e0   :  { %1073 = vmatpush.msrb.mxu1 %v895_v30  ;;  %v1555_v16 = vunpack.i.l.bf16 %v1554_v17  ;;  %v1520_v51 = vunpack.i.l.bf16 %v2105_v39  ;;  %v1525_v30 = vunpack.i.l.bf16 %v2139_v47 }
 0x1e1   :  { %v950_v42 = vsel %vm944_vm6, %v1451_v41, %v1540_v3  ;;  %v951_v8 = vsel %vm944_vm6, %v1540_v3, %v1541_v9  ;;  %v952_v56 = vsel %vm944_vm6, %v1541_v9, %v1510_v26  ;;  %v953_v9 = vsel %vm944_vm6, %v1510_v26, %v1511_v13 }
 0x1e2   :  { %1074 = vmatpush.msrb.mxu1 %v841_v10  ;;  %1092 = vmatpush.msrb.mxu2 %v950_v42  ;;  %v1526_v3 = vunpack.i.h.bf16 %v2139_v47  ;;  %v899_v42 = vsel %vm890_vm7, %v1515_v18, %v1516_v40  ;;  %v788_v26 = vsel %vm782_vm9, %v1466_v55, %v1555_v16  ;;  %v845_v17 = vsel %vm836_vm8, %v1520_v51, %v1521_v24 }
 0x1e3   :  { %1112 = vmatpush.msra.mxu3 %v951_v8  ;;  %1132 = vmatpush.msrb.mxu0 %v952_v56  ;;  %v789_v8 = vsel %vm782_vm9, %v1555_v16, %v1556_v27  ;;  %v1530_v56 = vunpack.i.l.bf16 %v2081_v60 }
 0x1e4   :  { %1075 = vmatpush.msrb.mxu1 %v787_v20 }
 0x1e6   :  { %1076 = vmatpush.msrb.mxu1 %v733_v14  ;;  %v1544_v33 = vpop.permute.xlu1 %1543  ;;  %v790_v14 = vsel %vm782_vm9, %v1556_v27, %v1525_v30  ;;  %v791_v27 = vsel %vm782_vm9, %v1525_v30, %v1526_v3 }
 0x1e7   :  { %v1546_v34 = vunpack.i.h.bf16 %v1544_v33  ;;  %v1545_v36 = vunpack.i.l.bf16 %v1544_v33  ;;  %v1549_v38 = vpop.permute.xlu0 %1548  ;;  %v1536_v33 = vunpack.i.h.bf16 %v2121_v1 }
 0x1e8   :  { %1077 = vmatpush.msrb.mxu1 %v679_v50  ;;  %v1551_v41 = vunpack.i.h.bf16 %v1549_v38  ;;  %v1550_v45 = vunpack.i.l.bf16 %v1549_v38  ;;  %v1535_v50 = vunpack.i.l.bf16 %v2121_v1  ;;  %v1505_v38 = vunpack.i.l.bf16 %v2074_v43 }
 0x1e9   :  { %v896_v59 = vsel %vm890_vm7, %v1456_v62, %v1545_v36  ;;  %v897_v63 = vsel %vm890_vm7, %v1545_v36, %v1546_v34  ;;  %v898_v25 = vsel %vm890_vm7, %v1546_v34, %v1515_v18  ;;  %v1506_v36 = vunpack.i.h.bf16 %v2074_v43 }
 0x1ea   :  { %1078 = vmatpush.msrb.mxu1 %v1902_v0  ;;  %1093 = vmatpush.msrb.mxu2 %v896_v59  ;;  %v842_v0 = vsel %vm836_vm8, %v1461_v4, %v1550_v45  ;;  %v843_v62 = vsel %vm836_vm8, %v1550_v45, %v1551_v41  ;;  %v844_v10 = vsel %vm836_vm8, %v1551_v41, %v1520_v51  ;;  %v1531_v4 = vunpack.i.h.bf16 %v2081_v60 }
 0x1eb   :  { %1113 = vmatpush.msra.mxu3 %v897_v63  ;;  %1133 = vmatpush.msrb.mxu0 %v898_v25  ;;  %v680_v59 = vsel %vm674_vm11, %v1446_v11, %v1535_v50  ;;  %v681_v23 = vsel %vm674_vm11, %v1535_v50, %v1536_v33  ;;  %v683_v63 = vsel %vm674_vm11, %v1505_v38, %v1506_v36  ;;  %v1574_v25 = vpop.permute.xlu2 %1573 }
 0x1ec   :  { %1152 = vmatpush.msra.mxu1 %v953_v9  ;;  %1094 = vmatpush.msrb.mxu2 %v842_v0  ;;  %v737_v16 = vsel %vm728_vm10, %v1530_v56, %v1531_v4  ;;  %v1576_v30 = vunpack.i.h.bf16 %v1574_v25  ;;  %v1575_v9 = vunpack.i.l.bf16 %v1574_v25 }
 0x1ed   :  { %1114 = vmatpush.msra.mxu3 %v843_v62  ;;  %1134 = vmatpush.msrb.mxu0 %v844_v10 }
 0x1ee   :  { %1153 = vmatpush.msra.mxu1 %v899_v42  ;;  %v1559_v20 = vpop.permute.xlu1 %1558  ;;  %1095 = vmatpush.msrb.mxu2 %v788_v26  ;;  %v900_v57 = vsel %vm890_vm7, %v1516_v40, %v1575_v9 }
 0x1ef   :  { %1115 = vmatpush.msra.mxu3 %v789_v8  ;;  %v1561_v55 = vunpack.i.h.bf16 %v1559_v20  ;;  %v1560_v18 = vunpack.i.l.bf16 %v1559_v20  ;;  %v889_v34 = vpop.permute.xlu0 %888  ;;  %1135 = vmatpush.msrb.mxu0 %v790_v14 }
 0x1f0   :  { %1154 = vmatpush.msra.mxu1 %v845_v17 }
 0x1f1   :  { %1358 = vmatmul.msk.f32.vlgmr.msrb.gmra.mxu1 %vm979_vm12, %v2072_v37  ;;  %v734_v1 = vsel %vm728_vm10, %v1471_v49, %v1560_v18  ;;  %v735_v41 = vsel %vm728_vm10, %v1560_v18, %v1561_v55  ;;  %v736_v45 = vsel %vm728_vm10, %v1561_v55, %v1530_v56  ;;  %v682_v49 = vsel %vm674_vm11, %v1536_v33, %v1505_v38 }
 0x1f2   :  { %1155 = vmatpush.msra.mxu1 %v791_v27  ;;  %1096 = vmatpush.msrb.mxu2 %v734_v1 }
 0x1f3   :  { %1116 = vmatpush.msra.mxu3 %v735_v41  ;;  %1136 = vmatpush.msrb.mxu0 %v736_v45  ;;  %v1589_v10 = vpop.permute.xlu2 %1588 }
 0x1f4   :  { %1156 = vmatpush.msra.mxu1 %v737_v16  ;;  %1097 = vmatpush.msrb.mxu2 %v680_v59  ;;  %v1591_v40 = vunpack.i.h.bf16 %v1589_v10  ;;  %v1590_v20 = vunpack.i.l.bf16 %v1589_v10  ;;  %v1248_v16 = vperm.slane %v1243_v7, 1  ;;  %v1249_v59 = vperm.slane %v1243_v7, 2 }
 0x1f5   :  { %1117 = vmatpush.msra.mxu3 %v681_v23  ;;  %1137 = vmatpush.msrb.mxu0 %v682_v49 }
 0x1f6   :  { %1157 = vmatpush.msra.mxu1 %v683_v63  ;;  %v943_v51 = vpop.permute.xlu1 %942  ;;  %1098 = vmatpush.msrb.mxu2 %v1904_v6  ;;  %v917_v6 = vsel %vm890_vm7, %v889_v34, %v1420_v35  ;;  %v902_v35 = vsel %vm890_vm7, %v1576_v30, %v889_v34  ;;  %v738_v39 = vsel %vm728_vm10, %v1531_v4, %v1590_v20 }
 0x1f7   :  { %1118 = vmatpush.msra.mxu3 %v1955_v31  ;;  %v971_v12 = vsel %vm944_vm6, %v943_v51, %v1415_v48  ;;  %v1569_v11 = vpop.permute.xlu0 %1568  ;;  %1138 = vmatpush.msrb.mxu0 %v1957_v32  ;;  %v901_v48 = vsel %vm890_vm7, %v1575_v9, %v1576_v30 }
 0x1f8   :  { %1158 = vmatpush.msra.mxu1 %v1939_v21  ;;  %v1571_v0 = vunpack.i.h.bf16 %v1569_v11  ;;  %v1570_v62 = vunpack.i.l.bf16 %v1569_v11  ;;  %1359 = vmatmul.msk.f32.vlgmr.msrb.gmra.mxu2 %vm979_vm12, %v2072_v37 }
 0x1f9   :  { %1360 = vmatmul.msk.f32.vlgmr.msra.gmra.mxu3 %vm979_vm12, %v2072_v37  ;;  %1361 = vmatmul.msk.f32.vlgmr.msrb.gmra.mxu0 %vm979_vm12, %v2072_v37 }
 0x1fa   :  { %1232 = vmatpush.msrb.mxu1 %v971_v12  ;;  %v954_v21 = vsel %vm944_vm6, %v1511_v13, %v1570_v62  ;;  %v955_v31 = vsel %vm944_vm6, %v1570_v62, %v1571_v0  ;;  %v956_v32 = vsel %vm944_vm6, %v1571_v0, %v943_v51  ;;  %v1254_v0 = vperm.slane %v1243_v7, 7 }
 0x1fb   :  { %1172 = vmatpush.msra.mxu2 %v954_v21  ;;  %1192 = vmatpush.msrb.mxu3 %v955_v31  ;;  %v781_v38 = vpop.permute.xlu2 %780 }
 0x1fc   :  { %1233 = vmatpush.msrb.mxu1 %v917_v6  ;;  %1212 = vmatpush.msra.mxu0 %v956_v32 }
 0x1fd   :  { %1362 = vmatmul.msk.f32.vlgmr.msra.gmra.mxu1 %vm979_vm12, %v2072_v37  ;;  %1173 = vmatpush.msra.mxu2 %v900_v57  ;;  %v1252_v57 = vperm.slane %v1243_v7, 5 }
 0x1fe   :  { %1193 = vmatpush.msrb.mxu3 %v901_v48  ;;  %1213 = vmatpush.msra.mxu0 %v902_v35  ;;  %v1564_v15 = vpop.permute.xlu1 %1563  ;;  %v1253_v35 = vperm.slane %v1243_v7, 6 }
 0x1ff   :  { %v1584_v13 = vpop.permute.xlu0 %1583  ;;  %v1566_v33 = vunpack.i.h.bf16 %v1564_v15  ;;  %v1565_v50 = vunpack.i.l.bf16 %v1564_v15 }
 0x200   :  { %v1586_v26 = vunpack.i.h.bf16 %v1584_v13  ;;  %v1585_v8 = vunpack.i.l.bf16 %v1584_v13 }
 0x201   :  { %v684_v47 = vsel %vm674_vm11, %v1506_v36, %v1565_v50  ;;  %v809_v36 = vsel %vm782_vm9, %v781_v38, %v1430_v5 }
 0x202   :  { %v792_v55 = vsel %vm782_vm9, %v1526_v3, %v1585_v8  ;;  %v793_v18 = vsel %vm782_vm9, %v1585_v8, %v1586_v26  ;;  %v685_v3 = vsel %vm674_vm11, %v1565_v50, %v1566_v33  ;;  %v794_v43 = vsel %vm782_vm9, %v1586_v26, %v781_v38 }
 0x203   :  { %v977_v5 = vpop.permute.xlu2 %976 }
 0x206   :  { %v1579_v42 = vpop.permute.xlu1 %1578 }
 0x207   :  { %v1581_v29 = vunpack.i.h.bf16 %v1579_v42  ;;  %v1580_v56 = vunpack.i.l.bf16 %v1579_v42  ;;  %v727_v4 = vpop.permute.xlu0 %726 }
 0x208   :  { %v740_v53 = vsel %vm728_vm10, %v1591_v40, %v727_v4 }
 0x209   :  { %v846_v14 = vsel %vm836_vm8, %v1521_v24, %v1580_v56  ;;  %v847_v17 = vsel %vm836_vm8, %v1580_v56, %v1581_v29  ;;  %v739_v24 = vsel %vm728_vm10, %v1590_v20, %v1591_v40 }
 0x20a   :  { %1174 = vmatpush.msra.mxu2 %v846_v14  ;;  %1194 = vmatpush.msrb.mxu3 %v847_v17  ;;  %v1244_v17 = vld [vmem:[%s2331_s6 + $0x8] sm:$0x1f] }
 0x20c   :  { %1175 = vmatpush.msra.mxu2 %v792_v55  ;;  %1195 = vmatpush.msrb.mxu3 %v793_v18  ;;  %v1258_v18 = vperm.slane %v1244_v17, 3 }
 0x20e   :  { %v835_v34 = vpop.permute.xlu1 %834  ;;  %1176 = vmatpush.msra.mxu2 %v738_v39  ;;  %1196 = vmatpush.msrb.mxu3 %v739_v24  ;;  %v1259_v39 = vperm.slane %v1244_v17, 4 }
 0x20f   :  { %v848_v27 = vsel %vm836_vm8, %v1581_v29, %v835_v34  ;;  %v863_v60 = vsel %vm836_vm8, %v835_v34, %v1425_v44  ;;  %v755_v44 = vsel %vm728_vm10, %v727_v4, %v1435_v19  ;;  %v1255_v34 = vperm.slane %v1244_v17, 0 }
 0x210   :  { %1177 = vmatpush.msra.mxu2 %v684_v47  ;;  %1197 = vmatpush.msrb.mxu3 %v685_v3 }
 0x211   :  { %1214 = vmatpush.msra.mxu0 %v848_v27  ;;  %1234 = vmatpush.msrb.mxu1 %v863_v60  ;;  %v1257_v60 = vperm.slane %v1244_v17, 2 }
 0x212   :  { %1178 = vmatpush.msra.mxu2 %v1941_v22  ;;  %1198 = vmatpush.msrb.mxu3 %v1976_v61 }
 0x213   :  { %1215 = vmatpush.msra.mxu0 %v794_v43  ;;  %1235 = vmatpush.msrb.mxu1 %v809_v36 }
 0x214   :  { %1363 = vmatmul.msk.f32.vlgmr.msra.gmra.mxu2 %vm979_vm12, %v2072_v37  ;;  %1364 = vmatmul.msk.f32.vlgmr.msrb.gmra.mxu3 %vm979_vm12, %v2072_v37 }
 0x215   :  { %1216 = vmatpush.msra.mxu0 %v740_v53  ;;  %1236 = vmatpush.msrb.mxu1 %v755_v44 }
 0x216   :  { %v673_v22 = vpop.permute.xlu1 %672 }
 0x217   :  { %v686_v61 = vsel %vm674_vm11, %v1566_v33, %v673_v22  ;;  %v701_v58 = vsel %vm674_vm11, %v673_v22, %v1440_v28  ;;  %v1250_v28 = vperm.slane %v1243_v7, 3  ;;  %v1256_v33 = vperm.slane %v1244_v17, 1 }
 0x218   :  { %1217 = vmatpush.msra.mxu0 %v686_v61  ;;  %1237 = vmatpush.msrb.mxu1 %v701_v58 }
 0x21a   :  { %1218 = vmatpush.msra.mxu0 %v1978_v2  ;;  %1238 = vmatpush.msrb.mxu1 %v1970_v52  ;;  %v1247_v2 = vperm.slane %v1243_v7, 0 }
 0x21b   :  { %1365 = vmatmul.msk.f32.vlgmr.msra.gmra.mxu0 %vm979_vm12, %v2072_v37  ;;  %1366 = vmatmul.msk.f32.vlgmr.msrb.gmra.mxu1 %vm979_vm12, %v2072_v37 }
 0x24c   :  { %v1060_v46 = vpop.f32.mrf.mxu0 }
 0x24d   :  { %v1061_v19 = vadd.f32 %v1060_v46, %v977_v5 }
 0x24f   :  { %v1276_v41 = vadd.f32 %v1250_v28, %v1061_v19 }
 0x251   :  { %v1299_v25 = vrot.slane %v1276_v41, 4 }
 0x25a   :  { %v1000_v1 = vpop.f32.mrf.mxu1 }
 0x25b   :  { %v1001_v45 = vadd.f32 %v1000_v1, %v977_v5 }
 0x25d   :  { %v1273_v37 = vadd.f32 %v1247_v2, %v1001_v45 }
 0x261   :  { %v1020_v52 = vpop.f32.mrf.mxu2 }
 0x262   :  { %v1021_v23 = vadd.f32 %v1020_v52, %v977_v5  ;;  %v1040_v49 = vpop.f32.mrf.mxu3 }
 0x263   :  { %v1041_v63 = vadd.f32 %v1040_v49, %v977_v5 }
 0x264   :  { %v1274_v51 = vadd.f32 %v1248_v16, %v1021_v23 }
 0x265   :  { %v1275_v12 = vadd.f32 %v1249_v59, %v1041_v63 }
 0x266   :  { %v1298_v11 = vrot.slane %v1274_v51, 4 }
 0x267   :  { %v1306_v30 = vsel %vm1304_vm13, %v1275_v12, %v1299_v25 }
 0x268   :  { %v1305_v9 = vsel %vm1304_vm13, %v1273_v37, %v1298_v11  ;;  %1318 = vst [vmem:[%s2332_s7 + $0x8] sm:$0xff] %v1306_v30 }
 0x269   :  { %1317 = vst [vmem:[%s2332_s7] sm:$0xff] %v1305_v9 }
 0x26e   :  { %v1080_v21 = vpop.f32.mrf.mxu1 }
 0x26f   :  { %v1081_v32 = vadd.f32 %v1080_v21, %v977_v5 }
 0x271   :  { %v1277_v26 = vadd.f32 %v1251_v54, %v1081_v32 }
 0x276   :  { %v1140_v62 = vpop.f32.mrf.mxu0 }
 0x277   :  { %v1141_v6 = vadd.f32 %v1140_v62, %v977_v5 }
 0x279   :  { %v1280_v31 = vadd.f32 %v1254_v0, %v1141_v6 }
 0x27a   :  { %v1160_v14 = vpop.f32.mrf.mxu1 }
 0x27b   :  { %v1100_v48 = vpop.f32.mrf.mxu2  ;;  %v1301_v42 = vrot.slane %v1280_v31, 4  ;;  %v1161_v24 = vadd.f32 %v1160_v14, %v977_v5 }
 0x27c   :  { %v1101_v15 = vadd.f32 %v1100_v48, %v977_v5  ;;  %v1120_v13 = vpop.f32.mrf.mxu3 }
 0x27d   :  { %v1121_v10 = vadd.f32 %v1120_v13, %v977_v5  ;;  %v1281_v22 = vadd.f32 %v1255_v34, %v1161_v24 }
 0x27e   :  { %v1278_v8 = vadd.f32 %v1252_v57, %v1101_v15 }
 0x27f   :  { %v1279_v29 = vadd.f32 %v1253_v35, %v1121_v10 }
 0x280   :  { %v1300_v56 = vrot.slane %v1278_v8, 4 }
 0x281   :  { %v1308_v40 = vsel %vm1304_vm13, %v1279_v29, %v1301_v42 }
 0x282   :  { %v1307_v20 = vsel %vm1304_vm13, %v1277_v26, %v1300_v56  ;;  %1320 = vst [vmem:[%s2332_s7 + $0x18] sm:$0xff] %v1308_v40 }
 0x283   :  { %1319 = vst [vmem:[%s2332_s7 + $0x10] sm:$0xff] %v1307_v20 }
 0x297   :  { %v1180_v50 = vpop.f32.mrf.mxu2  ;;  %v1200_v55 = vpop.f32.mrf.mxu3 }
 0x298   :  { %v1181_v38 = vadd.f32 %v1180_v50, %v977_v5  ;;  %v1220_v47 = vpop.f32.mrf.mxu0  ;;  %v1240_v3 = vpop.f32.mrf.mxu1  ;;  %v1201_v27 = vadd.f32 %v1200_v55, %v977_v5 }
 0x299   :  { %v1221_v4 = vadd.f32 %v1220_v47, %v977_v5  ;;  %v1241_v43 = vadd.f32 %v1240_v3, %v977_v5 }
 0x29a   :  { %v1282_v36 = vadd.f32 %v1256_v33, %v1181_v38  ;;  %v1283_v58 = vadd.f32 %v1257_v60, %v1201_v27 }
 0x29b   :  { %v1284_v53 = vadd.f32 %v1258_v18, %v1221_v4  ;;  %v1285_v44 = vadd.f32 %v1259_v39, %v1241_v43 }
 0x29c   :  { %v1302_v61 = vrot.slane %v1282_v36, 4 }
 0x29d   :  { %v1303_v46 = vrot.slane %v1284_v53, 4  ;;  %1323 = vst [vmem:[%s2332_s7 + $0x30] sm:$0xf] %v1285_v44 }
 0x29e   :  { %v1309_v7 = vsel %vm1304_vm13, %v1281_v22, %v1302_v61 }
 0x29f   :  { %1321 = vst [vmem:[%s2332_s7 + $0x20] sm:$0xff] %v1309_v7  ;;  %v1310_v19 = vsel %vm1304_vm13, %v1283_v58, %v1303_v46 }
 0x2a0   :  { %1322 = vst [vmem:[%s2332_s7 + $0x28] sm:$0xff] %v1310_v19 }

</bundles_post_ra>
